<compile_context>
chip_gen: v7x
topology: tpu7x:2x2x1
jax: 0.10.0
libtpu: 0.0.40
codegen_flags: <defaults>
</compile_context>

<pallas_src>
import numpy as np
import jax
import jax.numpy as jnp
from jax.experimental import pallas as pl
from jax.experimental.pallas import tpu as pltpu

NEG_SLOPE = 0.2   # LeakyReLU negative slope
EPS = 1e-5        # InstanceNorm2d default eps
LANES = 128


def _round_up(n, m):
    return ((n + m - 1) // m) * m


def _make_resblock_kernel(H, W, Cin_r, Cout, Cmid, Bt, offsets):
    """offsets[t] = flat-grid shift of tap t (t = dy*3+dx) on the padded grid."""
    inv_hw = 1.0 / float(H * W)
    K1, K2 = 9 * Cin_r, 9 * Cout

    def kernel(x_ref, mask_ref, wmat_ref, pvec_ref, o_ref):
        # x_ref   : (Bt, Cin_r, PP)  zero-padded, flattened input slabs
        # mask_ref: (1, PP)          1.0 on the H*W interior positions, else 0
        # wmat_ref: (Cout, 9*Cin_r + 9*Cout + Cin_r)  [conv1 | conv2 | identity]
        # pvec_ref: (Cout, 3 + 2*Cmid)                [gamma|beta|b_id|fc1|fc2^T]
        # o_ref   : (Bt, Cout, PP)   valid only at interior positions
        mask = mask_ref[...]                             # (1, PP)
        PP = mask.shape[1]

        # Unpack packed parameters once (static slices, hoisted out of the
        # per-image loop).
        wm = wmat_ref[...]
        w1s = wm[:, 0:K1]                                # (Cout, 9*Cin_r)
        w2s = wm[:, K1:K1 + K2]                          # (Cout, 9*Cout)
        wid = wm[:, K1 + K2:K1 + K2 + Cin_r]             # (Cout, Cin_r)
        pv = pvec_ref[...]
        gamma = pv[:, 0:1]
        beta = pv[:, 1:2]
        b_id = pv[:, 2:3]
        fc1 = pv[:, 3:3 + Cmid]                          # (Cout, Cmid)
        fc2 = pv[:, 3 + Cmid:3 + 2 * Cmid]               # (Cout, Cmid) = FC2^T

        def conv3x3(src, wstk):
            # Each tap is a constant lane shift (XLU roll) of the padded slab;
            # stack the 9 taps along the contraction axis and do a single MXU
            # matmul with K = 9*C instead of 9 tiny K=C matmuls.
            taps = [src if off == 0 else
                    pltpu.roll(src, shift=(-off) % PP, axis=1)
                    for off in offsets]
            stk = jnp.concatenate(taps, axis=0)          # (9*C, PP)
            return jnp.dot(wstk, stk, preferred_element_type=jnp.float32)

        for b in range(Bt):          # static unroll; Bt is small
            xp = x_ref[b]            # (Cin_r, PP)

            # ---- conv_1: 3x3, stride 1, pad 1, no bias ----------------------
            acc1 = conv3x3(xp, w1s)                      # (Cout, PP)

            # ---- InstanceNorm2d(affine): single-pass per-channel stats over
            #      the interior positions only ---------------------------------
            am = acc1 * mask
            s1 = jnp.sum(am, axis=1, keepdims=True)          # (Cout, 1)
            s2 = jnp.sum(am * acc1, axis=1, keepdims=True)   # (Cout, 1)
            mean = s1 * inv_hw
            var = jnp.maximum(s2 * inv_hw - mean * mean, 0.0)
            y = (acc1 - mean) * jax.lax.rsqrt(var + EPS) * gamma + beta
            # LeakyReLU(0.2)
            y = jnp.maximum(y, NEG_SLOPE * y)
            # Re-zero halo / lane tail so it acts as conv_2's zero padding.
            y = y * mask

            # ---- conv_2 + LeakyReLU ------------------------------------------
            acc2 = conv3x3(y, w2s)
            y2 = jnp.maximum(acc2, NEG_SLOPE * acc2)

            # ---- SE: avgpool -> Linear -> ReLU -> Linear -> Sigmoid -> scale
            # (1-row serial chain: kept on VPU/XLU, not MXU work)
            pooled = jnp.sum(y2 * mask, axis=1, keepdims=True) * inv_hw  # (Cout,1)
            h = jnp.maximum(
                jnp.sum(pooled * fc1, axis=0, keepdims=True), 0.0)       # (1,Cmid)
            s = jax.nn.sigmoid(
                jnp.sum(h * fc2, axis=1, keepdims=True))                 # (Cout,1)
            y2 = y2 * s

            # ---- identity branch: 1x1 conv with bias on the padded slab -----
            # (halo columns of xp are zero, so only the bias leaks into halo
            #  positions, which the wrapper discards.)
            ident = jnp.dot(wid, xp, preferred_element_type=jnp.float32) + b_id

            o_ref[b] = y2 + ident

    return kernel


def resblock_forward(x_nchw, params, block_b=8):
    """x_nchw: (B, Cin, H, W) float32  ->  (B, Cout, H, W) float32."""
    w1, gamma, beta = params['w1'], params['gamma'], params['beta']
    w2, fc1, fc2 = params['w2'], params['fc1'], params['fc2']
    wid, bid = params['wid'], params['bid']

    B, Cin, H, W = x_nchw.shape
    Cout = w1.shape[-1]
    Cmid = fc1.shape[-1]
    Hp, Wp = H + 2, W + 2
    P = Hp * Wp
    PP = _round_up(P, LANES)            # lane-dense flat length
    Cin_r = _round_up(Cin, 8)           # sublane-tile aligned input channels

    # Batch blocking: amortize per-grid-step pipeline overhead over Bt images.
    Bt = min(B, block_b)
    Bp = _round_up(B, Bt)

    # Tiny zero-pad of the NCHW input (no layout transposes): pad batch tail,
    # channels to Cin_r, spatial halo, then flatten padded spatial onto lanes.
    xpad = jnp.pad(x_nchw.astype(jnp.float32),
                   ((0, Bp - B), (0, Cin_r - Cin), (1, 1), (1, 1)))
    xflat = jnp.pad(xpad.reshape(Bp, Cin_r, P), ((0, 0), (0, 0), (0, PP - P)))

    # Interior mask: 1.0 at the H*W valid output positions of the padded grid.
    idx = np.arange(PP)
    row, col = idx // Wp, idx % Wp
    interior = (idx < P) & (row >= 1) & (row <= H) & (col >= 1) & (col <= W)
    mask = jnp.asarray(interior.astype(np.float32)).reshape(1, PP)

    # Packed weight matrix: contraction layout matches the in-kernel tap stack
    # [tap0 ch0..C-1, tap1 ch0..C-1, ...] with tap t = dy*3 + dx.
    w1p = jnp.pad(w1, ((0, 0), (0, 0), (0, Cin_r - Cin), (0, 0)))
    w1stk = jnp.transpose(w1p, (3, 0, 1, 2)).reshape(Cout, 9 * Cin_r)
    w2stk = jnp.transpose(w2, (3, 0, 1, 2)).reshape(Cout, 9 * Cout)
    widk = jnp.transpose(jnp.pad(wid, ((0, Cin_r - Cin), (0, 0))))   # (Cout, Cin_r)
    wmat = jnp.concatenate([w1stk, w2stk, widk], axis=1).astype(jnp.float32)

    # Packed per-channel parameters: [gamma | beta | bias_id | fc1 | fc2^T].
    pvec = jnp.concatenate(
        [gamma.reshape(Cout, 1), beta.reshape(Cout, 1), bid.reshape(Cout, 1),
         fc1, jnp.transpose(fc2)], axis=1).astype(jnp.float32)

    # Flat-grid shift of tap (dy, dx) relative to the output position.
    offsets = tuple((dy - 1) * Wp + (dx - 1)
                    for dy in range(3) for dx in range(3))

    flops = Bp * (2 * PP * (9 * Cin_r * Cout + 9 * Cout * Cout + Cin_r * Cout)
                  + 14 * Cout * PP)
    bytes_accessed = 4 * (Bp * (Cin_r + Cout) * PP
                          + int(wmat.size) + int(pvec.size) + PP)
    cost = pl.CostEstimate(flops=int(flops), transcendentals=int(Bp * 2 * Cout),
                           bytes_accessed=int(bytes_accessed))

    const2 = lambda g: (0, 0)

    out_flat = pl.pallas_call(
        _make_resblock_kernel(H, W, Cin_r, Cout, Cmid, Bt, offsets),
        out_shape=jax.ShapeDtypeStruct((Bp, Cout, PP), jnp.float32),
        grid_spec=pltpu.PrefetchScalarGridSpec(
            num_scalar_prefetch=0,
            grid=(Bp // Bt,),
            in_specs=[
                pl.BlockSpec((Bt, Cin_r, PP), lambda g: (g, 0, 0)),   # x slabs
                pl.BlockSpec((1, PP), const2),                        # mask
                pl.BlockSpec(wmat.shape, const2),                     # weights
                pl.BlockSpec(pvec.shape, const2),                     # params
            ],
            out_specs=pl.BlockSpec((Bt, Cout, PP), lambda g: (g, 0, 0)),
        ),
        # Batch blocks are independent -> shard the grid across TensorCores on
        # v7x (no-op on v5e/v6e).  If a profile shows one v7x TC idle, switch
        # to pltpu.CORE_PARALLEL.
        compiler_params=pltpu.CompilerParams(
            dimension_semantics=("parallel",)),
        cost_estimate=cost,
    )(xflat, mask, wmat, pvec)

    # Tiny interior extraction; result is already NCHW.
    out = out_flat[:B, :, :P].reshape(B, Cout, Hp, Wp)[:, :, 1:H + 1, 1:W + 1]
    return out


def resblock_reference(x_nchw, params):
    """Pure-JAX reference (semantics of the PyTorch module, bias=False)."""
    x = jnp.transpose(x_nchw, (0, 2, 3, 1)).astype(jnp.float32)
    conv = lambda inp, w: jax.lax.conv_general_dilated(
        inp, w, (1, 1), 'SAME', dimension_numbers=('NHWC', 'HWIO', 'NHWC'))

    h = conv(x, params['w1'])
    mean = h.mean(axis=(1, 2), keepdims=True)
    var = ((h - mean) ** 2).mean(axis=(1, 2), keepdims=True)
    h = (h - mean) * jax.lax.rsqrt(var + EPS)
    h = h * params['gamma'].reshape(1, 1, 1, -1) + params['beta'].reshape(1, 1, 1, -1)
    h = jnp.where(h >= 0, h, NEG_SLOPE * h)

    h2 = conv(h, params['w2'])
    h2 = jnp.where(h2 >= 0, h2, NEG_SLOPE * h2)

    # SE block: Linear layers have bias=False (ResBlock default bias=False is
    # forwarded to SE_Layer), matching the kernel.
    pooled = h2.mean(axis=(1, 2))                                   # (B, Cout)
    s = jax.nn.sigmoid(jnp.maximum(pooled @ params['fc1'], 0.0) @ params['fc2'])
    h2 = h2 * s[:, None, None, :]

    # identity 1x1 conv: PyTorch Conv2d default bias=True.
    ident = jnp.einsum('bhwc,cd->bhwd', x, params['wid']) \
        + params['bid'].reshape(1, 1, 1, -1)
    out = h2 + ident
    return jnp.transpose(out, (0, 3, 1, 2))


if __name__ == "__main__":
    key = jax.random.PRNGKey(0)
    B, Cin, Cout, H, W = 2, 4, 8, 16, 16
    Cmid = int(Cout * 0.75)   # SE hidden dim

    keys = jax.random.split(key, 10)
    # Deterministic synthetic parameters (shapes from the module __init__).
    params = {
        # conv_1 weight, stored HWIO (PyTorch OIHW transposed)
        'w1': jax.random.normal(keys[0], (3, 3, Cin, Cout), jnp.float32) * 0.1,
        # InstanceNorm2d affine params
        'gamma': 1.0 + 0.1 * jax.random.normal(keys[1], (Cout,), jnp.float32),
        'beta': 0.1 * jax.random.normal(keys[2], (Cout,), jnp.float32),
        # conv_2 weight (HWIO)
        'w2': jax.random.normal(keys[3], (3, 3, Cout, Cout), jnp.float32) * 0.1,
        # SE fc weights: y @ fc1 @ fc2 (fc1 = Linear1.weight.T, fc2 = Linear2.weight.T)
        'fc1': jax.random.normal(keys[4], (Cout, Cmid), jnp.float32) * 0.1,
        'fc2': jax.random.normal(keys[5], (Cmid, Cout), jnp.float32) * 0.1,
        # identity 1x1 conv (bias=True by PyTorch default), stored (Cin, Cout)
        'wid': jax.random.normal(keys[6], (Cin, Cout), jnp.float32) * 0.1,
        'bid': jax.random.normal(keys[7], (Cout,), jnp.float32) * 0.1,
    }
    x = jax.random.normal(keys[8], (B, Cin, H, W), jnp.float32)

    out = jax.block_until_ready(resblock_forward(x, params))
    ref = jax.block_until_ready(resblock_reference(x, params))

    assert out.shape == (B, Cout, H, W), out.shape
    np.testing.assert_allclose(np.asarray(out), np.asarray(ref),
                               rtol=5e-3, atol=5e-3)
    print("KERNEL_OK")
</pallas_src>

<mosaic_0001>
module attributes {stable_mosaic.version = 11 : i64} {
  func.func @kernel(%arg0: i32, %arg1: memref<2x8x384xf32, #tpu.memory_space<vmem>>, %arg2: memref<1x384xf32, #tpu.memory_space<vmem>>, %arg3: memref<8x152xf32, #tpu.memory_space<vmem>>, %arg4: memref<8x15xf32, #tpu.memory_space<vmem>>, %arg5: memref<2x8x384xf32, #tpu.memory_space<vmem>>) attributes {dimension_semantics = [#tpu.dimension_semantics<parallel>], iteration_bounds = array<i64: 1>, scalar_prefetch = 0 : i64, scratch_operands = 0 : i64, tpu.core_type = #tpu.core_type<tc>, window_params = [{transform_indices = @transform_0, window_bounds = array<i64: 2, 8, 384>}, {pipeline_mode = #tpu.pipeline_mode<synchronous>, transform_indices = @transform_1, window_bounds = array<i64: 1, 384>}, {pipeline_mode = #tpu.pipeline_mode<synchronous>, transform_indices = @transform_2, window_bounds = array<i64: 8, 152>}, {pipeline_mode = #tpu.pipeline_mode<synchronous>, transform_indices = @transform_3, window_bounds = array<i64: 8, 15>}, {transform_indices = @transform_4, window_bounds = array<i64: 2, 8, 384>}]} {
    %c0 = arith.constant 0 : index
    %c0_0 = arith.constant 0 : index
    %0 = vector.load %arg2[%c0, %c0_0] : memref<1x384xf32, #tpu.memory_space<vmem>>, vector<1x384xf32>
    %c0_1 = arith.constant 0 : index
    %c0_2 = arith.constant 0 : index
    %1 = vector.load %arg3[%c0_1, %c0_2] : memref<8x152xf32, #tpu.memory_space<vmem>>, vector<8x152xf32>
    %2 = vector.extract_strided_slice %1 {offsets = [0, 0], sizes = [8, 72], strides = [1, 1]} : vector<8x152xf32> to vector<8x72xf32>
    %3 = vector.extract_strided_slice %1 {offsets = [0, 72], sizes = [8, 72], strides = [1, 1]} : vector<8x152xf32> to vector<8x72xf32>
    %4 = vector.extract_strided_slice %1 {offsets = [0, 144], sizes = [8, 8], strides = [1, 1]} : vector<8x152xf32> to vector<8x8xf32>
    %c0_3 = arith.constant 0 : index
    %c0_4 = arith.constant 0 : index
    %5 = vector.load %arg4[%c0_3, %c0_4] : memref<8x15xf32, #tpu.memory_space<vmem>>, vector<8x15xf32>
    %6 = vector.extract_strided_slice %5 {offsets = [0, 0], sizes = [8, 1], strides = [1, 1]} : vector<8x15xf32> to vector<8x1xf32>
    %7 = vector.extract_strided_slice %5 {offsets = [0, 1], sizes = [8, 1], strides = [1, 1]} : vector<8x15xf32> to vector<8x1xf32>
    %8 = vector.extract_strided_slice %5 {offsets = [0, 2], sizes = [8, 1], strides = [1, 1]} : vector<8x15xf32> to vector<8x1xf32>
    %9 = vector.extract_strided_slice %5 {offsets = [0, 3], sizes = [8, 6], strides = [1, 1]} : vector<8x15xf32> to vector<8x6xf32>
    %10 = vector.extract_strided_slice %5 {offsets = [0, 9], sizes = [8, 6], strides = [1, 1]} : vector<8x15xf32> to vector<8x6xf32>
    %c0_5 = arith.constant 0 : index
    %c0_6 = arith.constant 0 : index
    %c0_7 = arith.constant 0 : index
    %11 = vector.load %arg1[%c0_5, %c0_6, %c0_7] : memref<2x8x384xf32, #tpu.memory_space<vmem>>, vector<1x8x384xf32>
    %12 = vector.shape_cast %11 : vector<1x8x384xf32> to vector<8x384xf32>
    %c19_i32 = arith.constant 19 : i32
    %13 = tpu.dynamic_rotate %12 by %c19_i32 dim 1 : vector<8x384xf32>, i32 -> vector<8x384xf32>
    %c18_i32 = arith.constant 18 : i32
    %14 = tpu.dynamic_rotate %12 by %c18_i32 dim 1 : vector<8x384xf32>, i32 -> vector<8x384xf32>
    %c17_i32 = arith.constant 17 : i32
    %15 = tpu.dynamic_rotate %12 by %c17_i32 dim 1 : vector<8x384xf32>, i32 -> vector<8x384xf32>
    %c1_i32 = arith.constant 1 : i32
    %16 = tpu.dynamic_rotate %12 by %c1_i32 dim 1 : vector<8x384xf32>, i32 -> vector<8x384xf32>
    %c383_i32 = arith.constant 383 : i32
    %17 = tpu.dynamic_rotate %12 by %c383_i32 dim 1 : vector<8x384xf32>, i32 -> vector<8x384xf32>
    %c367_i32 = arith.constant 367 : i32
    %18 = tpu.dynamic_rotate %12 by %c367_i32 dim 1 : vector<8x384xf32>, i32 -> vector<8x384xf32>
    %c366_i32 = arith.constant 366 : i32
    %19 = tpu.dynamic_rotate %12 by %c366_i32 dim 1 : vector<8x384xf32>, i32 -> vector<8x384xf32>
    %c365_i32 = arith.constant 365 : i32
    %20 = tpu.dynamic_rotate %12 by %c365_i32 dim 1 : vector<8x384xf32>, i32 -> vector<8x384xf32>
    %21 = tpu.concatenate %13, %14, %15, %16, %12, %17, %18, %19, %20 in 0 : vector<8x384xf32>, vector<8x384xf32>, vector<8x384xf32>, vector<8x384xf32>, vector<8x384xf32>, vector<8x384xf32>, vector<8x384xf32>, vector<8x384xf32>, vector<8x384xf32> -> vector<72x384xf32>
    %cst = arith.constant dense<0.000000e+00> : vector<8x384xf32>
    %22 = tpu.matmul %2, %21, %cst {dimension_numbers = #tpu.dot_dimension_numbers<[1], [0], [0], [1], [0, 0, 1, 1], [], []>} : vector<8x72xf32>, vector<72x384xf32>, vector<8x384xf32> -> vector<8x384xf32>
    %23 = vector.broadcast %0 : vector<1x384xf32> to vector<8x384xf32>
    %24 = arith.mulf %22, %23 : vector<8x384xf32>
    %cst_8 = arith.constant dense<0.000000e+00> : vector<8xf32>
    %25 = vector.multi_reduction <add>, %24, %cst_8 [1] : vector<8x384xf32> to vector<8xf32>
    %26 = vector.shape_cast %25 : vector<8xf32> to vector<8x1xf32>
    %27 = arith.mulf %24, %22 : vector<8x384xf32>
    %cst_9 = arith.constant dense<0.000000e+00> : vector<8xf32>
    %28 = vector.multi_reduction <add>, %27, %cst_9 [1] : vector<8x384xf32> to vector<8xf32>
    %29 = vector.shape_cast %28 : vector<8xf32> to vector<8x1xf32>
    %cst_10 = arith.constant 3.906250e-03 : f32
    %30 = vector.broadcast %cst_10 : f32 to vector<8x1xf32>
    %31 = arith.mulf %26, %30 : vector<8x1xf32>
    %cst_11 = arith.constant 3.906250e-03 : f32
    %32 = vector.broadcast %cst_11 : f32 to vector<8x1xf32>
    %33 = arith.mulf %29, %32 : vector<8x1xf32>
    %34 = arith.mulf %31, %31 : vector<8x1xf32>
    %35 = arith.subf %33, %34 : vector<8x1xf32>
    %cst_12 = arith.constant 0.000000e+00 : f32
    %36 = vector.broadcast %cst_12 : f32 to vector<8x1xf32>
    %37 = arith.maximumf %35, %36 : vector<8x1xf32>
    %38 = vector.broadcast %31 : vector<8x1xf32> to vector<8x384xf32>
    %39 = arith.subf %22, %38 : vector<8x384xf32>
    %cst_13 = arith.constant 9.99999974E-6 : f32
    %40 = vector.broadcast %cst_13 : f32 to vector<8x1xf32>
    %41 = arith.addf %37, %40 : vector<8x1xf32>
    %42 = math.rsqrt %41 : vector<8x1xf32>
    %43 = vector.broadcast %42 : vector<8x1xf32> to vector<8x384xf32>
    %44 = arith.mulf %39, %43 : vector<8x384xf32>
    %45 = vector.broadcast %6 : vector<8x1xf32> to vector<8x384xf32>
    %46 = arith.mulf %44, %45 : vector<8x384xf32>
    %47 = vector.broadcast %7 : vector<8x1xf32> to vector<8x384xf32>
    %48 = arith.addf %46, %47 : vector<8x384xf32>
    %cst_14 = arith.constant 2.000000e-01 : f32
    %49 = vector.broadcast %cst_14 : f32 to vector<8x384xf32>
    %50 = arith.mulf %49, %48 : vector<8x384xf32>
    %51 = arith.maximumf %48, %50 : vector<8x384xf32>
    %52 = vector.broadcast %0 : vector<1x384xf32> to vector<8x384xf32>
    %53 = arith.mulf %51, %52 : vector<8x384xf32>
    %c19_i32_15 = arith.constant 19 : i32
    %54 = tpu.dynamic_rotate %53 by %c19_i32_15 dim 1 : vector<8x384xf32>, i32 -> vector<8x384xf32>
    %c18_i32_16 = arith.constant 18 : i32
    %55 = tpu.dynamic_rotate %53 by %c18_i32_16 dim 1 : vector<8x384xf32>, i32 -> vector<8x384xf32>
    %c17_i32_17 = arith.constant 17 : i32
    %56 = tpu.dynamic_rotate %53 by %c17_i32_17 dim 1 : vector<8x384xf32>, i32 -> vector<8x384xf32>
    %c1_i32_18 = arith.constant 1 : i32
    %57 = tpu.dynamic_rotate %53 by %c1_i32_18 dim 1 : vector<8x384xf32>, i32 -> vector<8x384xf32>
    %c383_i32_19 = arith.constant 383 : i32
    %58 = tpu.dynamic_rotate %53 by %c383_i32_19 dim 1 : vector<8x384xf32>, i32 -> vector<8x384xf32>
    %c367_i32_20 = arith.constant 367 : i32
    %59 = tpu.dynamic_rotate %53 by %c367_i32_20 dim 1 : vector<8x384xf32>, i32 -> vector<8x384xf32>
    %c366_i32_21 = arith.constant 366 : i32
    %60 = tpu.dynamic_rotate %53 by %c366_i32_21 dim 1 : vector<8x384xf32>, i32 -> vector<8x384xf32>
    %c365_i32_22 = arith.constant 365 : i32
    %61 = tpu.dynamic_rotate %53 by %c365_i32_22 dim 1 : vector<8x384xf32>, i32 -> vector<8x384xf32>
    %62 = tpu.concatenate %54, %55, %56, %57, %53, %58, %59, %60, %61 in 0 : vector<8x384xf32>, vector<8x384xf32>, vector<8x384xf32>, vector<8x384xf32>, vector<8x384xf32>, vector<8x384xf32>, vector<8x384xf32>, vector<8x384xf32>, vector<8x384xf32> -> vector<72x384xf32>
    %cst_23 = arith.constant dense<0.000000e+00> : vector<8x384xf32>
    %63 = tpu.matmul %3, %62, %cst_23 {dimension_numbers = #tpu.dot_dimension_numbers<[1], [0], [0], [1], [0, 0, 1, 1], [], []>} : vector<8x72xf32>, vector<72x384xf32>, vector<8x384xf32> -> vector<8x384xf32>
    %cst_24 = arith.constant 2.000000e-01 : f32
    %64 = vector.broadcast %cst_24 : f32 to vector<8x384xf32>
    %65 = arith.mulf %64, %63 : vector<8x384xf32>
    %66 = arith.maximumf %63, %65 : vector<8x384xf32>
    %67 = vector.broadcast %0 : vector<1x384xf32> to vector<8x384xf32>
    %68 = arith.mulf %66, %67 : vector<8x384xf32>
    %cst_25 = arith.constant dense<0.000000e+00> : vector<8xf32>
    %69 = vector.multi_reduction <add>, %68, %cst_25 [1] : vector<8x384xf32> to vector<8xf32>
    %70 = vector.shape_cast %69 : vector<8xf32> to vector<8x1xf32>
    %cst_26 = arith.constant 3.906250e-03 : f32
    %71 = vector.broadcast %cst_26 : f32 to vector<8x1xf32>
    %72 = arith.mulf %70, %71 : vector<8x1xf32>
    %73 = vector.broadcast %72 : vector<8x1xf32> to vector<8x6xf32>
    %74 = arith.mulf %73, %9 : vector<8x6xf32>
    %cst_27 = arith.constant dense<0.000000e+00> : vector<6xf32>
    %75 = vector.multi_reduction <add>, %74, %cst_27 [0] : vector<8x6xf32> to vector<6xf32>
    %76 = vector.shape_cast %75 : vector<6xf32> to vector<1x6xf32>
    %cst_28 = arith.constant 0.000000e+00 : f32
    %77 = vector.broadcast %cst_28 : f32 to vector<1x6xf32>
    %78 = arith.maximumf %76, %77 : vector<1x6xf32>
    %79 = vector.broadcast %78 : vector<1x6xf32> to vector<8x6xf32>
    %80 = arith.mulf %79, %10 : vector<8x6xf32>
    %cst_29 = arith.constant dense<0.000000e+00> : vector<8xf32>
    %81 = vector.multi_reduction <add>, %80, %cst_29 [1] : vector<8x6xf32> to vector<8xf32>
    %82 = vector.shape_cast %81 : vector<8xf32> to vector<8x1xf32>
    %83 = arith.negf %82 : vector<8x1xf32>
    %84 = math.exp %83 : vector<8x1xf32>
    %cst_30 = arith.constant 1.000000e+00 : f32
    %85 = vector.broadcast %cst_30 : f32 to vector<8x1xf32>
    %86 = arith.addf %85, %84 : vector<8x1xf32>
    %87 = arith.divf %85, %86 : vector<8x1xf32>
    %88 = vector.broadcast %87 : vector<8x1xf32> to vector<8x384xf32>
    %89 = arith.mulf %66, %88 : vector<8x384xf32>
    %cst_31 = arith.constant dense<0.000000e+00> : vector<8x384xf32>
    %90 = tpu.matmul %4, %12, %cst_31 {dimension_numbers = #tpu.dot_dimension_numbers<[1], [0], [0], [1], [0, 0, 1, 1], [], []>} : vector<8x8xf32>, vector<8x384xf32>, vector<8x384xf32> -> vector<8x384xf32>
    %91 = vector.broadcast %8 : vector<8x1xf32> to vector<8x384xf32>
    %92 = arith.addf %90, %91 : vector<8x384xf32>
    %93 = arith.addf %89, %92 : vector<8x384xf32>
    %c0_32 = arith.constant 0 : index
    %c0_33 = arith.constant 0 : index
    %c0_34 = arith.constant 0 : index
    %94 = vector.load %arg5[%c0_32, %c0_33, %c0_34] : memref<2x8x384xf32, #tpu.memory_space<vmem>>, vector<1x8x384xf32>
    %95 = vector.shape_cast %94 : vector<1x8x384xf32> to vector<8x384xf32>
    %96 = vector.shape_cast %93 : vector<8x384xf32> to vector<1x8x384xf32>
    tpu.vector_store %arg5[%c0_32, %c0_33, %c0_34], %96 {strides = array<i32>} : memref<2x8x384xf32, #tpu.memory_space<vmem>>, vector<1x8x384xf32>,
    %c1 = arith.constant 1 : index
    %c0_35 = arith.constant 0 : index
    %c0_36 = arith.constant 0 : index
    %97 = vector.load %arg1[%c1, %c0_35, %c0_36] : memref<2x8x384xf32, #tpu.memory_space<vmem>>, vector<1x8x384xf32>
    %98 = vector.shape_cast %97 : vector<1x8x384xf32> to vector<8x384xf32>
    %c19_i32_37 = arith.constant 19 : i32
    %99 = tpu.dynamic_rotate %98 by %c19_i32_37 dim 1 : vector<8x384xf32>, i32 -> vector<8x384xf32>
    %c18_i32_38 = arith.constant 18 : i32
    %100 = tpu.dynamic_rotate %98 by %c18_i32_38 dim 1 : vector<8x384xf32>, i32 -> vector<8x384xf32>
    %c17_i32_39 = arith.constant 17 : i32
    %101 = tpu.dynamic_rotate %98 by %c17_i32_39 dim 1 : vector<8x384xf32>, i32 -> vector<8x384xf32>
    %c1_i32_40 = arith.constant 1 : i32
    %102 = tpu.dynamic_rotate %98 by %c1_i32_40 dim 1 : vector<8x384xf32>, i32 -> vector<8x384xf32>
    %c383_i32_41 = arith.constant 383 : i32
    %103 = tpu.dynamic_rotate %98 by %c383_i32_41 dim 1 : vector<8x384xf32>, i32 -> vector<8x384xf32>
    %c367_i32_42 = arith.constant 367 : i32
    %104 = tpu.dynamic_rotate %98 by %c367_i32_42 dim 1 : vector<8x384xf32>, i32 -> vector<8x384xf32>
    %c366_i32_43 = arith.constant 366 : i32
    %105 = tpu.dynamic_rotate %98 by %c366_i32_43 dim 1 : vector<8x384xf32>, i32 -> vector<8x384xf32>
    %c365_i32_44 = arith.constant 365 : i32
    %106 = tpu.dynamic_rotate %98 by %c365_i32_44 dim 1 : vector<8x384xf32>, i32 -> vector<8x384xf32>
    %107 = tpu.concatenate %99, %100, %101, %102, %98, %103, %104, %105, %106 in 0 : vector<8x384xf32>, vector<8x384xf32>, vector<8x384xf32>, vector<8x384xf32>, vector<8x384xf32>, vector<8x384xf32>, vector<8x384xf32>, vector<8x384xf32>, vector<8x384xf32> -> vector<72x384xf32>
    %cst_45 = arith.constant dense<0.000000e+00> : vector<8x384xf32>
    %108 = tpu.matmul %2, %107, %cst_45 {dimension_numbers = #tpu.dot_dimension_numbers<[1], [0], [0], [1], [0, 0, 1, 1], [], []>} : vector<8x72xf32>, vector<72x384xf32>, vector<8x384xf32> -> vector<8x384xf32>
    %109 = vector.broadcast %0 : vector<1x384xf32> to vector<8x384xf32>
    %110 = arith.mulf %108, %109 : vector<8x384xf32>
    %cst_46 = arith.constant dense<0.000000e+00> : vector<8xf32>
    %111 = vector.multi_reduction <add>, %110, %cst_46 [1] : vector<8x384xf32> to vector<8xf32>
    %112 = vector.shape_cast %111 : vector<8xf32> to vector<8x1xf32>
    %113 = arith.mulf %110, %108 : vector<8x384xf32>
    %cst_47 = arith.constant dense<0.000000e+00> : vector<8xf32>
    %114 = vector.multi_reduction <add>, %113, %cst_47 [1] : vector<8x384xf32> to vector<8xf32>
    %115 = vector.shape_cast %114 : vector<8xf32> to vector<8x1xf32>
    %cst_48 = arith.constant 3.906250e-03 : f32
    %116 = vector.broadcast %cst_48 : f32 to vector<8x1xf32>
    %117 = arith.mulf %112, %116 : vector<8x1xf32>
    %cst_49 = arith.constant 3.906250e-03 : f32
    %118 = vector.broadcast %cst_49 : f32 to vector<8x1xf32>
    %119 = arith.mulf %115, %118 : vector<8x1xf32>
    %120 = arith.mulf %117, %117 : vector<8x1xf32>
    %121 = arith.subf %119, %120 : vector<8x1xf32>
    %cst_50 = arith.constant 0.000000e+00 : f32
    %122 = vector.broadcast %cst_50 : f32 to vector<8x1xf32>
    %123 = arith.maximumf %121, %122 : vector<8x1xf32>
    %124 = vector.broadcast %117 : vector<8x1xf32> to vector<8x384xf32>
    %125 = arith.subf %108, %124 : vector<8x384xf32>
    %cst_51 = arith.constant 9.99999974E-6 : f32
    %126 = vector.broadcast %cst_51 : f32 to vector<8x1xf32>
    %127 = arith.addf %123, %126 : vector<8x1xf32>
    %128 = math.rsqrt %127 : vector<8x1xf32>
    %129 = vector.broadcast %128 : vector<8x1xf32> to vector<8x384xf32>
    %130 = arith.mulf %125, %129 : vector<8x384xf32>
    %131 = vector.broadcast %6 : vector<8x1xf32> to vector<8x384xf32>
    %132 = arith.mulf %130, %131 : vector<8x384xf32>
    %133 = vector.broadcast %7 : vector<8x1xf32> to vector<8x384xf32>
    %134 = arith.addf %132, %133 : vector<8x384xf32>
    %cst_52 = arith.constant 2.000000e-01 : f32
    %135 = vector.broadcast %cst_52 : f32 to vector<8x384xf32>
    %136 = arith.mulf %135, %134 : vector<8x384xf32>
    %137 = arith.maximumf %134, %136 : vector<8x384xf32>
    %138 = vector.broadcast %0 : vector<1x384xf32> to vector<8x384xf32>
    %139 = arith.mulf %137, %138 : vector<8x384xf32>
    %c19_i32_53 = arith.constant 19 : i32
    %140 = tpu.dynamic_rotate %139 by %c19_i32_53 dim 1 : vector<8x384xf32>, i32 -> vector<8x384xf32>
    %c18_i32_54 = arith.constant 18 : i32
    %141 = tpu.dynamic_rotate %139 by %c18_i32_54 dim 1 : vector<8x384xf32>, i32 -> vector<8x384xf32>
    %c17_i32_55 = arith.constant 17 : i32
    %142 = tpu.dynamic_rotate %139 by %c17_i32_55 dim 1 : vector<8x384xf32>, i32 -> vector<8x384xf32>
    %c1_i32_56 = arith.constant 1 : i32
    %143 = tpu.dynamic_rotate %139 by %c1_i32_56 dim 1 : vector<8x384xf32>, i32 -> vector<8x384xf32>
    %c383_i32_57 = arith.constant 383 : i32
    %144 = tpu.dynamic_rotate %139 by %c383_i32_57 dim 1 : vector<8x384xf32>, i32 -> vector<8x384xf32>
    %c367_i32_58 = arith.constant 367 : i32
    %145 = tpu.dynamic_rotate %139 by %c367_i32_58 dim 1 : vector<8x384xf32>, i32 -> vector<8x384xf32>
    %c366_i32_59 = arith.constant 366 : i32
    %146 = tpu.dynamic_rotate %139 by %c366_i32_59 dim 1 : vector<8x384xf32>, i32 -> vector<8x384xf32>
    %c365_i32_60 = arith.constant 365 : i32
    %147 = tpu.dynamic_rotate %139 by %c365_i32_60 dim 1 : vector<8x384xf32>, i32 -> vector<8x384xf32>
    %148 = tpu.concatenate %140, %141, %142, %143, %139, %144, %145, %146, %147 in 0 : vector<8x384xf32>, vector<8x384xf32>, vector<8x384xf32>, vector<8x384xf32>, vector<8x384xf32>, vector<8x384xf32>, vector<8x384xf32>, vector<8x384xf32>, vector<8x384xf32> -> vector<72x384xf32>
    %cst_61 = arith.constant dense<0.000000e+00> : vector<8x384xf32>
    %149 = tpu.matmul %3, %148, %cst_61 {dimension_numbers = #tpu.dot_dimension_numbers<[1], [0], [0], [1], [0, 0, 1, 1], [], []>} : vector<8x72xf32>, vector<72x384xf32>, vector<8x384xf32> -> vector<8x384xf32>
    %cst_62 = arith.constant 2.000000e-01 : f32
    %150 = vector.broadcast %cst_62 : f32 to vector<8x384xf32>
    %151 = arith.mulf %150, %149 : vector<8x384xf32>
    %152 = arith.maximumf %149, %151 : vector<8x384xf32>
    %153 = vector.broadcast %0 : vector<1x384xf32> to vector<8x384xf32>
    %154 = arith.mulf %152, %153 : vector<8x384xf32>
    %cst_63 = arith.constant dense<0.000000e+00> : vector<8xf32>
    %155 = vector.multi_reduction <add>, %154, %cst_63 [1] : vector<8x384xf32> to vector<8xf32>
    %156 = vector.shape_cast %155 : vector<8xf32> to vector<8x1xf32>
    %cst_64 = arith.constant 3.906250e-03 : f32
    %157 = vector.broadcast %cst_64 : f32 to vector<8x1xf32>
    %158 = arith.mulf %156, %157 : vector<8x1xf32>
    %159 = vector.broadcast %158 : vector<8x1xf32> to vector<8x6xf32>
    %160 = arith.mulf %159, %9 : vector<8x6xf32>
    %cst_65 = arith.constant dense<0.000000e+00> : vector<6xf32>
    %161 = vector.multi_reduction <add>, %160, %cst_65 [0] : vector<8x6xf32> to vector<6xf32>
    %162 = vector.shape_cast %161 : vector<6xf32> to vector<1x6xf32>
    %cst_66 = arith.constant 0.000000e+00 : f32
    %163 = vector.broadcast %cst_66 : f32 to vector<1x6xf32>
    %164 = arith.maximumf %162, %163 : vector<1x6xf32>
    %165 = vector.broadcast %164 : vector<1x6xf32> to vector<8x6xf32>
    %166 = arith.mulf %165, %10 : vector<8x6xf32>
    %cst_67 = arith.constant dense<0.000000e+00> : vector<8xf32>
    %167 = vector.multi_reduction <add>, %166, %cst_67 [1] : vector<8x6xf32> to vector<8xf32>
    %168 = vector.shape_cast %167 : vector<8xf32> to vector<8x1xf32>
    %169 = arith.negf %168 : vector<8x1xf32>
    %170 = math.exp %169 : vector<8x1xf32>
    %cst_68 = arith.constant 1.000000e+00 : f32
    %171 = vector.broadcast %cst_68 : f32 to vector<8x1xf32>
    %172 = arith.addf %171, %170 : vector<8x1xf32>
    %173 = arith.divf %171, %172 : vector<8x1xf32>
    %174 = vector.broadcast %173 : vector<8x1xf32> to vector<8x384xf32>
    %175 = arith.mulf %152, %174 : vector<8x384xf32>
    %cst_69 = arith.constant dense<0.000000e+00> : vector<8x384xf32>
    %176 = tpu.matmul %4, %98, %cst_69 {dimension_numbers = #tpu.dot_dimension_numbers<[1], [0], [0], [1], [0, 0, 1, 1], [], []>} : vector<8x8xf32>, vector<8x384xf32>, vector<8x384xf32> -> vector<8x384xf32>
    %177 = vector.broadcast %8 : vector<8x1xf32> to vector<8x384xf32>
    %178 = arith.addf %176, %177 : vector<8x384xf32>
    %179 = arith.addf %175, %178 : vector<8x384xf32>
    %c1_70 = arith.constant 1 : index
    %c0_71 = arith.constant 0 : index
    %c0_72 = arith.constant 0 : index
    %180 = vector.load %arg5[%c1_70, %c0_71, %c0_72] : memref<2x8x384xf32, #tpu.memory_space<vmem>>, vector<1x8x384xf32>
    %181 = vector.shape_cast %180 : vector<1x8x384xf32> to vector<8x384xf32>
    %182 = vector.shape_cast %179 : vector<8x384xf32> to vector<1x8x384xf32>
    tpu.vector_store %arg5[%c1_70, %c0_71, %c0_72], %182 {strides = array<i32>} : memref<2x8x384xf32, #tpu.memory_space<vmem>>, vector<1x8x384xf32>,
    return
  }
  func.func @transform_0(%arg0: i32) -> (i32, i32, i32) {
    %c0_i32 = arith.constant 0 : i32
    %c0_i32_0 = arith.constant 0 : i32
    %c0_i32_1 = arith.constant 0 : i32
    return %arg0, %c0_i32, %c0_i32_0 : i32, i32, i32
  }
  func.func @transform_1(%arg0: i32) -> (i32, i32) {
    %c0_i32 = arith.constant 0 : i32
    %c0_i32_0 = arith.constant 0 : i32
    %c0_i32_1 = arith.constant 0 : i32
    return %c0_i32, %c0_i32_0 : i32, i32
  }
  func.func @transform_2(%arg0: i32) -> (i32, i32) {
    %c0_i32 = arith.constant 0 : i32
    %c0_i32_0 = arith.constant 0 : i32
    %c0_i32_1 = arith.constant 0 : i32
    return %c0_i32, %c0_i32_0 : i32, i32
  }
  func.func @transform_3(%arg0: i32) -> (i32, i32) {
    %c0_i32 = arith.constant 0 : i32
    %c0_i32_0 = arith.constant 0 : i32
    %c0_i32_1 = arith.constant 0 : i32
    return %c0_i32, %c0_i32_0 : i32, i32
  }
  func.func @transform_4(%arg0: i32) -> (i32, i32, i32) {
    %c0_i32 = arith.constant 0 : i32
    %c0_i32_0 = arith.constant 0 : i32
    %c0_i32_1 = arith.constant 0 : i32
    return %arg0, %c0_i32, %c0_i32_0 : i32, i32, i32
  }
}

</mosaic_0001>

<bundles_post_ra>
// kernel: tpu_custom_call.1
= control target key start
LH: loop header
LB: loop body
LE: loop exit
PB: predicated region body
PF: predicated region fallthrough
CT: control target
= control target key end

     0   :  { %9 = vsyncpa [#allocation3], 0  ;;  %s2655_s0 = inlined_call_operand.hbm [shape: f32[2,8,384], index: 0, kind: input, shape index: {}]   ;;  %s2656_s1 = inlined_call_operand.vmem [shape: f32[1,384], index: 1, kind: input, shape index: {}]   ;;  %s2657_s2 = inlined_call_operand.hbm [shape: f32[8,152], index: 2, kind: input, shape index: {}]   ;;  %s2658_s3 = inlined_call_operand.vmem [shape: f32[8,15], index: 3, kind: input, shape index: {}]   ;;  %s2659_s4 = inlined_call_operand.hbm [shape: f32[2,8,384], index: 4, kind: output, shape index: {}]  }
   0x1   :  { %10 = vsyncpa [#allocation6], 0 }
   0x2   :  { %11 = vsyncpa [#allocation4], 0  ;;  %s1976_s15 = smov [#allocation2]   ;;  %s1904_s19 = scalar_lea.hbm %s2655_s0, 768 }
   0x3   :  { %s17_s16 = sshll.u32 %s1976_s15, 4  ;;  %p1905_p0 = scmp.ne.s32.totalorder %s2655_s0, %s1904_s19  ;;  %s18_s16 = int_to_ptr.vmem [resolvable:$true] %s17_s16 }
   0x4   :  { %p1908_p1 = scmp.lt.u32.totalorder %s1904_s19, %s2655_s0 }
   0x6   :  { %p1910_p2 = pnand %p1908_p1, %p1905_p0 }
   0x8   :  { %1913 = shalt.err (!%p1910_p2)
}
   0x9   :  { %s1914_s24 = scalar_lea.vmem %s18_s16, 768  ;;  %p1919_p4 = scmp.lt.s32.totalorder %s18_s16, %s18_s16 }
   0xa   :  { %p1915_p3 = scmp.ne.s32.totalorder %s18_s16, %s1914_s24  ;;  %p1920_p5 = scmp.lt.s32.totalorder %s1914_s24, %s1914_s24 }
   0xc   :  { %p1921_p6 = por %p1920_p5, %p1919_p4 }
   0xe   :  { %p1922_p7 = pnand %p1921_p6, %p1915_p3 }
  0x10   :  { %1925 = shalt.err (!%p1922_p7)
}
  0x11   :  { %s1977_s25 = smov 384   ;;  %s1978_s26 = smov 24  }
  0x12   :  { %23 = dma.hbm_to_vmem [thread:$0]  %s2655_s0, 768, %s18_s16, [#allocation3], %s1977_s25, %s1977_s25, %s1978_s26  }
  0x13   :  { %s1979_s29 = smov [#allocation5]   ;;  %s1926_s7 = scalar_lea.hbm %s2657_s2, 256 }
  0x14   :  { %s32_s30 = sshll.u32 %s1979_s29, 4  ;;  %p1927_p8 = scmp.ne.s32.totalorder %s2657_s2, %s1926_s7  ;;  %s33_s30 = int_to_ptr.vmem [resolvable:$true] %s32_s30 }
  0x15   :  { %p1930_p9 = scmp.lt.u32.totalorder %s1926_s7, %s2657_s2 }
  0x17   :  { %p1932_p10 = pnand %p1930_p9, %p1927_p8 }
  0x19   :  { %1935 = shalt.err (!%p1932_p10)
}
  0x1a   :  { %s1936_s12 = scalar_lea.vmem %s33_s30, 256  ;;  %p1941_p12 = scmp.lt.s32.totalorder %s33_s30, %s33_s30 }
  0x1b   :  { %p1937_p11 = scmp.ne.s32.totalorder %s33_s30, %s1936_s12  ;;  %p1942_p13 = scmp.lt.s32.totalorder %s1936_s12, %s1936_s12 }
  0x1d   :  { %p1943_p0 = por %p1942_p13, %p1941_p12 }
  0x1f   :  { %p1944_p1 = pnand %p1943_p0, %p1937_p11 }
  0x21   :  { %1947 = shalt.err (!%p1944_p1)
}
  0x22   :  { %35 = dma.hbm_to_vmem [thread:$0]  %s2657_s2, 256, %s33_s30, [#allocation6]  }
  0x23   :  { %1970 = dma.done.wait [#allocation3], 768  }
  0x24   :  { %1971 = vsyncadd [#allocation3], 4294966528 }
  0x25   :  { %1972 = dma.done.wait [#allocation6], 256  }
  0x26   :  { %1973 = vsyncadd [#allocation6], 4294967040  ;;  %v1980_v0 = vmov 0.0|0.0   ;;  %v2052_v1 = vld [vmem:[#allocation2 + $0x10] sm:$0xff]  ;;  %v2054_v2 = vld [vmem:[#allocation2] sm:$0xff]  ;;  %s1981_s14 = smov 19   ;;  %v57_v7 = vlaneseq }
  0x27   :  { %1614 = vmatprep.subr.bf16.mxu1 %v1980_v0  ;;  %v2056_v3 = vld [vmem:[#allocation2 + $0x8] sm:$0xff]  ;;  %55 = vrot.lane.b32.xlu1 %v2052_v1, %s1981_s14  ;;  %s1982_s2 = smov 18   ;;  %s1983_s15 = smov 1   ;;  %v1987_v6 = vmov 0.0   ;;  %vm1989_vm0 = vmmov 0   ;;  %vm133_vm9 = vcmask 588800  }
  0x28   :  { %v1733_v4 = vpack.i.bf16 %v2056_v3, %v2054_v2  ;;  %s1984_s16 = smov 17   ;;  %v1753_v5 = vpack.i.bf16 %v2052_v1, %v2056_v3  ;;  %s1985_s17 = smov 127   ;;  %201 = vmatprep.mubr.f32.mxu0 %v1987_v6  ;;  %1522 = vmatprep.mubr.msk.f32.mxu1 %vm1989_vm0, %v1987_v6  ;;  %v2093_v9 = vand.u32 127, %v57_v7  ;;  %vm422_vm10 = vcmask 457728  }
  0x29   :  { %s1986_s18 = smov 110   ;;  %s1988_s19 = smov 111   ;;  %vm618_vm11 = vcmask 64512   ;;  %vm582_vm12 = vcmask 72728   ;;  %vm599_vm13 = vcmask 48128  }
  0x2a   :  { %1734 = vrot.lane.b32.xlu0 %v1733_v4, %s1981_s14  ;;  %s1990_s20 = smov 109   ;;  %vm59_vm1 = vcmp.lt.s32.totalorder %v2093_v9, 19  ;;  %vm69_vm2 = vcmp.lt.s32.totalorder %v2093_v9, 18  ;;  %vm89_vm3 = vcmp.lt.s32.totalorder %v2093_v9, 1  ;;  %vm79_vm4 = vcmp.lt.s32.totalorder %v2093_v9, 17  ;;  %s1993_s24 = smov 56  }
  0x2b   :  { %67 = vrot.lane.b32.xlu1 %v2052_v1, %s1982_s2  ;;  %vm99_vm5 = vcmp.lt.s32.totalorder %v2093_v9, 127  ;;  %vm119_vm6 = vcmp.lt.s32.totalorder %v2093_v9, 110  ;;  %vm109_vm7 = vcmp.lt.s32.totalorder %v2093_v9, 111  ;;  %vm129_vm8 = vcmp.lt.s32.totalorder %v2093_v9, 109  ;;  %s1994_s27 = smov 112   ;;  %s1995_s28 = smov 122  }
  0x2c   :  { %s1996_s29 = smov 125  }
  0x2e   :  { %1739 = vrot.lane.b32.xlu0 %v1733_v4, %s1982_s2 }
  0x2f   :  { %1749 = vrot.lane.b32.xlu1 %v1733_v4, %s1983_s15 }
  0x32   :  { %1744 = vrot.lane.b32.xlu0 %v1733_v4, %s1984_s16 }
  0x33   :  { %87 = vrot.lane.b32.xlu1 %v2052_v1, %s1983_s15 }
  0x36   :  { %77 = vrot.lane.b32.xlu0 %v2052_v1, %s1984_s16 }
  0x37   :  { %93 = vrot.lane.b32.xlu1 %v2054_v2, %s1985_s17 }
  0x3a   :  { %1754 = vrot.lane.b32.xlu0 %v1753_v5, %s1985_s17 }
  0x3b   :  { %1764 = vrot.lane.b32.xlu1 %v1753_v5, %s1986_s18 }
  0x3e   :  { %1759 = vrot.lane.b32.xlu0 %v1753_v5, %s1988_s19 }
  0x3f   :  { %113 = vrot.lane.b32.xlu1 %v2054_v2, %s1986_s18 }
  0x42   :  { %103 = vrot.lane.b32.xlu0 %v2054_v2, %s1988_s19 }
  0x43   :  { %127 = vrot.lane.b32.xlu1 %v2052_v1, %s1990_s20 }
  0x46   :  { %125 = vrot.lane.b32.xlu0 %v2056_v3, %s1990_s20 }
  0x4a   :  { %123 = vrot.lane.b32.xlu0 %v2054_v2, %s1990_s20 }
  0x99   :  { %v56_v8 = vpop.permute.xlu1 %55 }
  0x9c   :  { %v1735_v10 = vpop.permute.xlu0 %1734 }
  0x9d   :  { %v1737_v11 = vunpack.i.h.bf16 %v1735_v10  ;;  %v1736_v12 = vunpack.i.l.bf16 %v1735_v10  ;;  %v68_v13 = vpop.permute.xlu1 %67 }
  0x9f   :  { %v61_v18 = vsel %vm59_vm1, %v1736_v12, %v1737_v11  ;;  %v60_v19 = vsel %vm59_vm1, %v1737_v11, %v56_v8  ;;  %v62_v27 = vsel %vm59_vm1, %v56_v8, %v1736_v12 }
  0xa0   :  { %v1740_v14 = vpop.permute.xlu0 %1739 }
  0xa1   :  { %v1742_v15 = vunpack.i.h.bf16 %v1740_v14  ;;  %v1741_v16 = vunpack.i.l.bf16 %v1740_v14  ;;  %v1750_v17 = vpop.permute.xlu1 %1749 }
  0xa2   :  { %v1752_v20 = vunpack.i.h.bf16 %v1750_v17  ;;  %v1751_v21 = vunpack.i.l.bf16 %v1750_v17  ;;  %v2154_v17 = vld [vmem:[#allocation5] sm:$0xff] }
  0xa3   :  { %v71_v22 = vsel %vm69_vm2, %v1741_v16, %v1742_v15  ;;  %v70_v23 = vsel %vm69_vm2, %v1742_v15, %v68_v13  ;;  %v72_v28 = vsel %vm69_vm2, %v68_v13, %v1741_v16 }
  0xa4   :  { %v1745_v24 = vpop.permute.xlu0 %1744  ;;  %v1598_v25 = vpack.c.bf16 %v71_v22, %v61_v18  ;;  %v1615_v26 = vpack.c.bf16 %v70_v23, %v60_v19  ;;  %v1600_v31 = vpack.c.bf16 %v72_v28, %v62_v27  ;;  %v91_v32 = vsel %vm89_vm3, %v1751_v21, %v1752_v20 }
  0xa5   :  { %v1747_v29 = vunpack.i.h.bf16 %v1745_v24  ;;  %v1746_v30 = vunpack.i.l.bf16 %v1745_v24  ;;  %v88_v33 = vpop.permute.xlu1 %87  ;;  %v280_v22 = vshrl.u32 %v57_v7, 7  ;;  %v44_v24 = vld [vmem:[%s2656_s1] sm:$0x7] }
  0xa6   :  { %1599 = vmatprep.subr.bf16.mxu0 %v1598_v25  ;;  %1616 = vmatpush3.bf16.msra.mxu1 %v1615_v26  ;;  %v90_v34 = vsel %vm89_vm3, %v1752_v20, %v88_v33  ;;  %v92_v35 = vsel %vm89_vm3, %v88_v33, %v1751_v21  ;;  %v1991_v20 = vmov 0   ;;  %v1992_v21 = vmov 1  }
  0xa7   :  { %1601 = vmatpush1.bf16.msra.mxu0 %v1600_v31  ;;  %v81_v36 = vsel %vm79_vm4, %v1746_v30, %v1747_v29  ;;  %1617 = vmatprep.subr.bf16.mxu1 %v1980_v0  ;;  %v281_v23 = vsub.s32 0, %v280_v22  ;;  %v285_v25 = vsub.s32 1, %v280_v22  ;;  %v289_v26 = vsub.s32 2, %v280_v22 }
  0xa8   :  { %v78_v37 = vpop.permute.xlu0 %77  ;;  %v1602_v38 = vpack.c.bf16 %v91_v32, %v81_v36  ;;  %1768 = vset.pattern.permute.xlu0 %v1991_v20  ;;  %1769 = vset.pattern.permute.xlu1 %v1992_v21 }
  0xa9   :  { %v80_v39 = vsel %vm79_vm4, %v1747_v29, %v78_v37  ;;  %v82_v40 = vsel %vm79_vm4, %v78_v37, %v1746_v30  ;;  %v94_v43 = vpop.permute.xlu1 %93  ;;  %v2172_v27 = vrot.slane %v44_v24, %v281_v23  ;;  %v2174_v28 = vrot.slane %v44_v24, %v285_v25  ;;  %v2229_v25 = vld [vmem:[#allocation2 + $0x18] sm:$0xff] }
  0xaa   :  { %v1604_v41 = vpack.c.bf16 %v92_v35, %v82_v40  ;;  %v1618_v42 = vpack.c.bf16 %v90_v34, %v80_v39  ;;  %1603 = vmatprep.subr.bf16.mxu0 %v1602_v38  ;;  %v2176_v29 = vrot.slane %v44_v24, %v289_v26 }
  0xac   :  { %v1755_v44 = vpop.permute.xlu0 %1754  ;;  %1605 = vmatpush1.bf16.msra.mxu0 %v1604_v41  ;;  %1619 = vmatpush3.bf16.msra.mxu1 %v1618_v42 }
  0xad   :  { %v1757_v45 = vunpack.i.h.bf16 %v1755_v44  ;;  %v1756_v46 = vunpack.i.l.bf16 %v1755_v44  ;;  %1620 = vmatprep.subr.bf16.mxu1 %v1980_v0  ;;  %v1765_v47 = vpop.permute.xlu1 %1764  ;;  %v46_v44 = vld [vmem:[#allocation5 + $0x8] sm:$0xff] }
  0xae   :  { %v1767_v48 = vunpack.i.h.bf16 %v1765_v47  ;;  %v1766_v49 = vunpack.i.l.bf16 %v1765_v47 }
  0xaf   :  { %v100_v50 = vsel %vm99_vm5, %v1756_v46, %v1757_v45  ;;  %v102_v51 = vsel %vm99_vm5, %v1757_v45, %v94_v43  ;;  %v101_v55 = vsel %vm99_vm5, %v94_v43, %v1756_v46  ;;  %v2184_v43 = vld [vmem:[%s2658_s3] sm:$0xff]  ;;  %v2191_v46 = vld [vmem:[#allocation2 + $0x28] sm:$0xff] }
  0xb0   :  { %v1760_v52 = vpop.permute.xlu0 %1759  ;;  %v1606_v53 = vpack.c.bf16 %v100_v50, %v2056_v3  ;;  %v1621_v54 = vpack.c.bf16 %v102_v51, %v2052_v1  ;;  %v1608_v58 = vpack.c.bf16 %v101_v55, %v2054_v2  ;;  %v120_v59 = vsel %vm119_vm6, %v1766_v49, %v1767_v48  ;;  %v2189_v45 = vld [vmem:[#allocation2 + $0x20] sm:$0xff] }
  0xb1   :  { %v1762_v56 = vunpack.i.h.bf16 %v1760_v52  ;;  %v1761_v57 = vunpack.i.l.bf16 %v1760_v52  ;;  %v114_v60 = vpop.permute.xlu1 %113  ;;  %v2195_v47 = vpack.i.bf16 %v2191_v46, %v2189_v45 }
  0xb2   :  { %1607 = vmatprep.subr.bf16.mxu0 %v1606_v53  ;;  %1622 = vmatpush3.bf16.msra.mxu1 %v1621_v54  ;;  %v121_v61 = vsel %vm119_vm6, %v114_v60, %v1766_v49  ;;  %v122_v62 = vsel %vm119_vm6, %v1767_v48, %v114_v60 }
  0xb3   :  { %1609 = vmatpush1.bf16.msra.mxu0 %v1608_v58  ;;  %v110_v63 = vsel %vm109_vm7, %v1761_v57, %v1762_v56  ;;  %1623 = vmatprep.subr.bf16.mxu1 %v1980_v0 }
  0xb4   :  { %v104_v4 = vpop.permute.xlu0 %103  ;;  %v1610_v5 = vpack.c.bf16 %v120_v59, %v110_v63 }
  0xb5   :  { %v111_v8 = vsel %vm109_vm7, %v104_v4, %v1761_v57  ;;  %v112_v10 = vsel %vm109_vm7, %v1762_v56, %v104_v4  ;;  %v128_v13 = vpop.permute.xlu1 %127 }
  0xb6   :  { %v1612_v11 = vpack.c.bf16 %v121_v61, %v111_v8  ;;  %v1624_v12 = vpack.c.bf16 %v122_v62, %v112_v10  ;;  %1611 = vmatprep.subr.bf16.mxu0 %v1610_v5 }
  0xb8   :  { %v126_v14 = vpop.permute.xlu0 %125  ;;  %1613 = vmatpush1.bf16.msra.mxu0 %v1612_v11  ;;  %1625 = vmatpush3.bf16.msra.mxu1 %v1624_v12 }
  0xb9   :  { %v130_v15 = vsel %vm129_vm8, %v126_v14, %v128_v13  ;;  %1520 = vmatprep.subr.mxu1 %v1987_v6 }
  0xba   :  { %153 = vmatprep.subr.mxu0 %v130_v15 }
  0xbc   :  { %v124_v16 = vpop.permute.xlu0 %123 }
  0xbd   :  { %v131_v18 = vsel %vm129_vm8, %v124_v16, %v126_v14  ;;  %v132_v19 = vsel %vm129_vm8, %v128_v13, %v124_v16 }
  0xbe   :  { %154 = vmatpush1.msra.mxu0 %v131_v18  ;;  %1521 = vmatpush3.msra.mxu1 %v132_v19 }
  0xbf   :  { %1446 = vmatmul.mubr.msk.f32.vlgmr.msra.gmra.mrb[0].mxu0 %vm133_vm9, %v2154_v17  ;;  %1523 = vmatmul.mubr.msk.f32.vlgmr.msra.gmra.mrb[0].mxu1 %vm133_vm9, %v2154_v17 }
  0xc0   :  { %1642 = vmatprep.subr.bf16.mxu1 %v1980_v0  ;;  %490 = vmatprep.mubr.f32.mxu0 %v1987_v6 }
  0xc1   :  { %1543 = vmatprep.mubr.msk.f32.mxu1 %vm1989_vm0, %v1987_v6 }
 0x192   :  { %v203_v30 = vpop.f32.mrb[0].mxu0  ;;  %v274_v31 = vpop.f32.mrb[0].mxu1 }
 0x193   :  { %v294_v32 = vmul.f32 %v2172_v27, %v203_v30  ;;  %v205_v33 = vpop.f32.mrb[1].mxu0  ;;  %v1524_v34 = vpop.f32.mrb[1].mxu1  ;;  %v296_v35 = vmul.f32 %v2176_v29, %v274_v31 }
 0x194   :  { %v295_v7 = vmul.f32 %v2174_v28, %v205_v33 }
 0x195   :  { %v301_v36 = vmul.f32 %v294_v32, %v203_v30  ;;  %v303_v40 = vmul.f32 %v296_v35, %v274_v31 }
 0x196   :  { %v302_v37 = vmul.f32 %v295_v7, %v205_v33  ;;  %v297_v38 = vadd.f32 %v295_v7, %v294_v32 }
 0x198   :  { %v298_v39 = vadd.f32 %v297_v38, %v296_v35  ;;  %v304_v41 = vadd.f32 %v302_v37, %v301_v36 }
 0x19a   :  { %299 = vadd.xlane.f32.xlu1 %v298_v39  ;;  %v305_v42 = vadd.f32 %v304_v41, %v303_v40 }
 0x19c   :  { %306 = vadd.xlane.f32.xlu0 %v305_v42 }
 0x1ab   :  { %330 = vperm.xlu1 %1769, %v2184_v43  }
 0x1af   :  { %420 = vrot.lane.b32.xlu1 %v46_v44, %s1993_s24 }
 0x1b2   :  { %323 = vperm.xlu0 %1768, %v2184_v43  }
 0x1b3   :  { %1776 = vrot.lane.b32.xlu1 %v2195_v47, %s1982_s2 }
 0x1b6   :  { %418 = vrot.lane.b32.xlu0 %v2154_v17, %s1993_s24 }
 0x1b7   :  { %1781 = vrot.lane.b32.xlu1 %v2195_v47, %s1984_s16 }
 0x1ba   :  { %1771 = vrot.lane.b32.xlu0 %v2195_v47, %s1981_s14 }
 0x1be   :  { %616 = vrot.lane.b32.xlu0 %v46_v44, %s1994_s27 }
 0x227   :  { %v300_v48 = vpop.xlane.xlu1 %299 }
 0x228   :  { %v308_v49 = vmul.f32 0.00390625, %v300_v48 }
 0x229   :  { %v307_v50 = vpop.xlane.xlu0 %306 }
 0x22a   :  { %v309_v51 = vmul.f32 0.00390625, %v307_v50  ;;  %v310_v52 = vmul.f32 %v308_v49, %v308_v49  ;;  %v313_v56 = vsub.f32 %v203_v30, %v308_v49  ;;  %v314_v57 = vsub.f32 %v205_v33, %v308_v49 }
 0x22b   :  { %v315_v58 = vsub.f32 %v274_v31, %v308_v49  ;;  %v2205_v4 = vpop.permute.xlu1 %330  ;;  %v1835_v31 = vpack.i.bf16 %v2189_v45, %v2229_v25 }
 0x22c   :  { %v311_v53 = vsub.f32 %v309_v51, %v310_v52 }
 0x22e   :  { %v312_v54 = vmax.f32 %v311_v53, 0.0 }
 0x22f   :  { %v2277_v32 = vpop.permute.xlu1 %420 }
 0x230   :  { %v316_v55 = vadd.f32 1e-05, %v312_v54 }
 0x231   :  { %v2203_v60 = vpop.permute.xlu0 %323 }
 0x232   :  { %1891 = vrsqrt.f32 %v316_v55 }
 0x233   :  { %v2279_v33 = vpop.permute.xlu1 %1776 }
 0x235   :  { %v2281_v34 = vpop.permute.xlu0 %418 }
 0x237   :  { %v2283_v7 = vpop.permute.xlu1 %1781 }
 0x239   :  { %v2285_v35 = vpop.permute.xlu0 %1771 }
 0x23c   :  { %v1892_v59 = vpop.eup %1891 }
 0x23d   :  { %v318_v61 = vmul.f32 %v1892_v59, %v313_v56  ;;  %v319_v62 = vmul.f32 %v1892_v59, %v314_v57  ;;  %v320_v63 = vmul.f32 %v1892_v59, %v315_v58  ;;  %v2287_v37 = vpop.permute.xlu0 %616 }
 0x23f   :  { %v326_v5 = vmul.f32 %v2203_v60, %v318_v61  ;;  %v327_v8 = vmul.f32 %v2203_v60, %v319_v62  ;;  %v328_v10 = vmul.f32 %v2203_v60, %v320_v63 }
 0x241   :  { %v333_v11 = vadd.f32 %v2205_v4, %v326_v5  ;;  %v334_v12 = vadd.f32 %v2205_v4, %v327_v8  ;;  %v335_v13 = vadd.f32 %v2205_v4, %v328_v10 }
 0x243   :  { %v336_v14 = vmul.f32 0.2, %v333_v11  ;;  %v337_v15 = vmul.f32 0.2, %v334_v12  ;;  %v338_v16 = vmul.f32 0.2, %v335_v13 }
 0x245   :  { %v339_v18 = vmax.f32 %v333_v11, %v336_v14  ;;  %v340_v19 = vmax.f32 %v334_v12, %v337_v15  ;;  %v341_v20 = vmax.f32 %v335_v13, %v338_v16 }
 0x247   :  { %v2214_v21 = vmul.f32 %v339_v18, %v2172_v27  ;;  %v2217_v22 = vmul.f32 %v340_v19, %v2174_v28  ;;  %v2220_v23 = vmul.f32 %v341_v20, %v2176_v29 }
 0x249   :  { %376 = vrot.lane.b32.xlu0 %v2220_v23, %s1983_s15  ;;  %v1785_v24 = vpack.i.bf16 %v2217_v22, %v2214_v21  ;;  %v1830_v26 = vpack.i.bf16 %v2220_v23, %v2217_v22  ;;  %v1795_v30 = vpack.i.bf16 %v2229_v25, %v2220_v23 }
 0x24b   :  { %1786 = vrot.lane.b32.xlu1 %v1785_v24, %s1981_s14 }
 0x24d   :  { %381 = vrot.lane.b32.xlu0 %v2214_v21, %s1985_s17 }
 0x24f   :  { %1791 = vrot.lane.b32.xlu1 %v1785_v24, %s1982_s2 }
 0x251   :  { %1831 = vrot.lane.b32.xlu0 %v1830_v26, %s1986_s18 }
 0x253   :  { %1796 = vrot.lane.b32.xlu1 %v1795_v30, %s1981_s14 }
 0x255   :  { %399 = vrot.lane.b32.xlu0 %v2214_v21, %s1986_s18 }
 0x257   :  { %1801 = vrot.lane.b32.xlu1 %v1795_v30, %s1982_s2 }
 0x259   :  { %412 = vrot.lane.b32.xlu0 %v2220_v23, %s1990_s20 }
 0x25b   :  { %1806 = vrot.lane.b32.xlu1 %v1785_v24, %s1984_s16 }
 0x25d   :  { %1836 = vrot.lane.b32.xlu0 %v1835_v31, %s1983_s15 }
 0x25f   :  { %1811 = vrot.lane.b32.xlu1 %v1785_v24, %s1983_s15 }
 0x261   :  { %1841 = vrot.lane.b32.xlu0 %v2195_v47, %s1985_s17 }
 0x263   :  { %1816 = vrot.lane.b32.xlu1 %v1795_v30, %s1984_s16 }
 0x265   :  { %1846 = vrot.lane.b32.xlu0 %v2195_v47, %s1988_s19 }
 0x267   :  { %1821 = vrot.lane.b32.xlu1 %v1830_v26, %s1985_s17 }
 0x269   :  { %817 = vrot.lane.b32.xlu0 %v2229_v25, %s1988_s19 }
 0x26b   :  { %1826 = vrot.lane.b32.xlu1 %v1830_v26, %s1988_s19 }
 0x26d   :  { %837 = vrot.lane.b32.xlu0 %v2189_v45, %s1990_s20 }
 0x26f   :  { %390 = vrot.lane.b32.xlu1 %v2214_v21, %s1988_s19 }
 0x271   :  { %835 = vrot.lane.b32.xlu0 %v2229_v25, %s1990_s20 }
 0x273   :  { %410 = vrot.lane.b32.xlu1 %v2217_v22, %s1990_s20 }
 0x277   :  { %408 = vrot.lane.b32.xlu1 %v2214_v21, %s1990_s20 }
 0x27b   :  { %803 = vrot.lane.b32.xlu1 %v2191_v46, %s1983_s15 }
 0x27f   :  { %808 = vrot.lane.b32.xlu1 %v2229_v25, %s1985_s17 }
 0x283   :  { %1851 = vrot.lane.b32.xlu1 %v2195_v47, %s1986_s18 }
 0x287   :  { %826 = vrot.lane.b32.xlu1 %v2229_v25, %s1986_s18 }
 0x28b   :  { %839 = vrot.lane.b32.xlu1 %v2191_v46, %s1990_s20 }
 0x2bb   :  { %v377_v50 = vpop.permute.xlu0 %376 }
 0x2bd   :  { %v1787_v36 = vpop.permute.xlu1 %1786 }
 0x2be   :  { %v1789_v38 = vunpack.i.h.bf16 %v1787_v36  ;;  %v1788_v39 = vunpack.i.l.bf16 %v1787_v36 }
 0x2bf   :  { %v382_v54 = vpop.permute.xlu0 %381 }
 0x2c0   :  { %v352_v44 = vsel %vm59_vm1, %v1788_v39, %v1789_v38 }
 0x2c1   :  { %v1792_v40 = vpop.permute.xlu1 %1791 }
 0x2c2   :  { %v1794_v41 = vunpack.i.h.bf16 %v1792_v40  ;;  %v1793_v42 = vunpack.i.l.bf16 %v1792_v40 }
 0x2c3   :  { %v1832_v10 = vpop.permute.xlu0 %1831 }
 0x2c4   :  { %v361_v47 = vsel %vm69_vm2, %v1793_v42, %v1794_v41 }
 0x2c5   :  { %v2293_v48 = vpop.permute.xlu1 %1796  ;;  %v1626_v49 = vpack.c.bf16 %v361_v47, %v352_v44 }
 0x2c6   :  { %v1798_v51 = vunpack.i.l.bf16 %v2293_v48 }
 0x2c7   :  { %1627 = vmatprep.subr.bf16.mxu0 %v1626_v49  ;;  %v400_v19 = vpop.permute.xlu0 %399 }
 0x2c8   :  { %v351_v55 = vsel %vm59_vm1, %v1789_v38, %v1798_v51  ;;  %v353_v56 = vsel %vm59_vm1, %v1798_v51, %v1788_v39 }
 0x2c9   :  { %v2296_v52 = vpop.permute.xlu1 %1801 }
 0x2ca   :  { %v1803_v53 = vunpack.i.l.bf16 %v2296_v52 }
 0x2cc   :  { %v360_v57 = vsel %vm69_vm2, %v1794_v41, %v1803_v53  ;;  %v362_v58 = vsel %vm69_vm2, %v1803_v53, %v1793_v42  ;;  %v1834_v41 = vunpack.i.h.bf16 %v1832_v10  ;;  %v1833_v42 = vunpack.i.l.bf16 %v1832_v10 }
 0x2cd   :  { %v1628_v59 = vpack.c.bf16 %v362_v58, %v353_v56  ;;  %v1643_v61 = vpack.c.bf16 %v360_v57, %v351_v55  ;;  %v1807_v62 = vpop.permute.xlu1 %1806  ;;  %v413_v56 = vpop.permute.xlu0 %412 }
 0x2ce   :  { %v1809_v63 = vunpack.i.h.bf16 %v1807_v62  ;;  %v1808_v5 = vunpack.i.l.bf16 %v1807_v62 }
 0x2cf   :  { %1629 = vmatpush1.bf16.msra.mxu0 %v1628_v59  ;;  %1644 = vmatpush3.bf16.msra.mxu1 %v1643_v61  ;;  %v405_v59 = vsel %vm119_vm6, %v1833_v42, %v1834_v41 }
 0x2d0   :  { %1645 = vmatprep.subr.bf16.mxu1 %v1980_v0  ;;  %v370_v13 = vsel %vm79_vm4, %v1808_v5, %v1809_v63 }
 0x2d1   :  { %v1812_v8 = vpop.permute.xlu1 %1811  ;;  %v1837_v62 = vpop.permute.xlu0 %1836 }
 0x2d2   :  { %v1814_v11 = vunpack.i.h.bf16 %v1812_v8  ;;  %v1813_v12 = vunpack.i.l.bf16 %v1812_v8 }
 0x2d4   :  { %v379_v14 = vsel %vm89_vm3, %v1813_v12, %v1814_v11  ;;  %v378_v20 = vsel %vm89_vm3, %v1814_v11, %v377_v50  ;;  %v380_v24 = vsel %vm89_vm3, %v377_v50, %v1813_v12  ;;  %v1804_v11 = vunpack.i.h.bf16 %v2296_v52 }
 0x2d5   :  { %v2312_v15 = vpop.permute.xlu1 %1816  ;;  %v1630_v16 = vpack.c.bf16 %v379_v14, %v370_v13  ;;  %v2350_v14 = vpop.permute.xlu0 %1841  ;;  %v1774_v52 = vunpack.i.h.bf16 %v2285_v35 }
 0x2d6   :  { %v1818_v18 = vunpack.i.l.bf16 %v2312_v15 }
 0x2d7   :  { %1631 = vmatprep.subr.bf16.mxu0 %v1630_v16  ;;  %v1779_v16 = vunpack.i.h.bf16 %v2279_v33 }
 0x2d8   :  { %v369_v26 = vsel %vm79_vm4, %v1809_v63, %v1818_v18  ;;  %v371_v30 = vsel %vm79_vm4, %v1818_v18, %v1808_v5  ;;  %v1778_v18 = vunpack.i.l.bf16 %v2279_v33 }
 0x2d9   :  { %v1632_v31 = vpack.c.bf16 %v380_v24, %v371_v30  ;;  %v1646_v36 = vpack.c.bf16 %v378_v20, %v369_v26  ;;  %v1822_v38 = vpop.permute.xlu1 %1821  ;;  %v1773_v20 = vunpack.i.l.bf16 %v2285_v35  ;;  %v1839_v24 = vunpack.i.h.bf16 %v1837_v62 }
 0x2da   :  { %v1824_v39 = vunpack.i.h.bf16 %v1822_v38  ;;  %v1823_v40 = vunpack.i.l.bf16 %v1822_v38  ;;  %v788_v30 = vsel %vm69_vm2, %v1804_v11, %v1778_v18  ;;  %v787_v35 = vsel %vm69_vm2, %v1778_v18, %v1779_v16 }
 0x2db   :  { %1633 = vmatpush1.bf16.msra.mxu0 %v1632_v31  ;;  %1647 = vmatpush3.bf16.msra.mxu1 %v1646_v36  ;;  %v1838_v31 = vunpack.i.l.bf16 %v1837_v62  ;;  %v1819_v36 = vunpack.i.h.bf16 %v2312_v15  ;;  %v1843_v15 = vunpack.i.l.bf16 %v2350_v14 }
 0x2dc   :  { %v389_v44 = vsel %vm99_vm5, %v1824_v39, %v382_v54  ;;  %v388_v47 = vsel %vm99_vm5, %v382_v54, %v1823_v40  ;;  %1648 = vmatprep.subr.bf16.mxu1 %v1980_v0  ;;  %v387_v49 = vsel %vm99_vm5, %v1823_v40, %v1824_v39  ;;  %v1783_v39 = vunpack.i.l.bf16 %v2283_v7 }
 0x2dd   :  { %v1649_v50 = vpack.c.bf16 %v389_v44, %v2220_v23  ;;  %v1636_v51 = vpack.c.bf16 %v388_v47, %v2214_v21  ;;  %v1827_v53 = vpop.permute.xlu1 %1826  ;;  %v1634_v55 = vpack.c.bf16 %v387_v49, %v2217_v22  ;;  %v406_v21 = vsel %vm119_vm6, %v400_v19, %v1833_v42 }
 0x2de   :  { %v1829_v57 = vunpack.i.h.bf16 %v1827_v53  ;;  %v1828_v58 = vunpack.i.l.bf16 %v1827_v53  ;;  %v407_v22 = vsel %vm119_vm6, %v1834_v41, %v400_v19  ;;  %v1799_v19 = vunpack.i.h.bf16 %v2293_v48 }
 0x2df   :  { %1635 = vmatprep.subr.bf16.mxu0 %v1634_v55  ;;  %1650 = vmatpush3.bf16.msra.mxu1 %v1649_v50  ;;  %v2366_v48 = vsel %vm422_vm10, %v2281_v34, %v2277_v32  ;;  %v1844_v40 = vunpack.i.h.bf16 %v2350_v14  ;;  %v1847_v34 = vpop.permute.xlu0 %1846  ;;  %v778_v41 = vsel %vm59_vm1, %v1773_v20, %v1774_v52  ;;  %v789_v42 = vsel %vm69_vm2, %v1779_v16, %v1804_v11 }
 0x2e0   :  { %1637 = vmatpush1.bf16.msra.mxu0 %v1636_v51  ;;  %v396_v54 = vsel %vm109_vm7, %v1828_v58, %v1829_v57  ;;  %1651 = vmatprep.subr.bf16.mxu1 %v1980_v0  ;;  %v779_v32 = vsel %vm59_vm1, %v1799_v19, %v1773_v20  ;;  %v797_v49 = vsel %vm79_vm4, %v1819_v36, %v1783_v39  ;;  %v1784_v51 = vunpack.i.h.bf16 %v2283_v7 }
 0x2e1   :  { %v391_v23 = vpop.permute.xlu1 %390  ;;  %v1638_v61 = vpack.c.bf16 %v405_v59, %v396_v54  ;;  %v1654_v47 = vpack.c.bf16 %v788_v30, %v779_v32  ;;  %v806_v50 = vsel %vm89_vm3, %v1838_v31, %v1839_v24  ;;  %v1671_v53 = vpack.c.bf16 %v787_v35, %v778_v41 }
 0x2e2   :  { %v397_v63 = vsel %vm109_vm7, %v391_v23, %v1828_v58  ;;  %v398_v5 = vsel %vm109_vm7, %v1829_v57, %v391_v23  ;;  %v1658_v57 = vpack.c.bf16 %v806_v50, %v797_v49  ;;  %v796_v54 = vsel %vm79_vm4, %v1783_v39, %v1784_v51 }
 0x2e3   :  { %v1640_v8 = vpack.c.bf16 %v406_v21, %v397_v63  ;;  %v1652_v10 = vpack.c.bf16 %v407_v22, %v398_v5  ;;  %1639 = vmatprep.subr.bf16.mxu0 %v1638_v61  ;;  %v818_v58 = vpop.permute.xlu0 %817  ;;  %v798_v59 = vsel %vm79_vm4, %v1784_v51, %v1819_v36  ;;  %v1849_v22 = vunpack.i.h.bf16 %v1847_v34 }
 0x2e4   :  { %v1848_v62 = vunpack.i.l.bf16 %v1847_v34 }
 0x2e5   :  { %v411_v12 = vpop.permute.xlu1 %410  ;;  %1641 = vmatpush1.bf16.msra.mxu0 %v1640_v8  ;;  %1653 = vmatpush3.bf16.msra.mxu1 %v1652_v10 }
 0x2e6   :  { %v414_v13 = vsel %vm129_vm8, %v411_v12, %v413_v56  ;;  %1541 = vmatprep.subr.mxu1 %v1987_v6  ;;  %v823_v16 = vsel %vm109_vm7, %v1848_v62, %v1849_v22 }
 0x2e7   :  { %442 = vmatprep.subr.mxu0 %v414_v13  ;;  %v838_v14 = vpop.permute.xlu0 %837 }
 0x2e9   :  { %v409_v26 = vpop.permute.xlu1 %408 }
 0x2ea   :  { %v415_v38 = vsel %vm129_vm8, %v409_v26, %v411_v12  ;;  %v416_v33 = vsel %vm129_vm8, %v413_v56, %v409_v26 }
 0x2eb   :  { %443 = vmatpush1.msra.mxu0 %v415_v38  ;;  %1542 = vmatpush3.msra.mxu1 %v416_v33  ;;  %v836_v33 = vpop.permute.xlu0 %835 }
 0x2ec   :  { %1448 = vmatmul.mubr.msk.f32.vlgmr.msra.gmra.mrb[2].mxu0 %vm133_vm9, %v2366_v48  ;;  %1544 = vmatmul.mubr.msk.f32.vlgmr.msra.gmra.mrb[2].mxu1 %vm133_vm9, %v2366_v48 }
 0x2ed   :  { %621 = vmatprep.subr.mxu0 %v2056_v3  ;;  %v804_v44 = vpop.permute.xlu1 %803  ;;  %1546 = vmatprep.subr.mxu1 %v1987_v6  ;;  %v780_v3 = vsel %vm59_vm1, %v1774_v52, %v1799_v19  ;;  %v824_v19 = vsel %vm109_vm7, %v818_v58, %v1848_v62 }
 0x2ee   :  { %622 = vmatpush1.msra.mxu0 %v2054_v2  ;;  %1547 = vmatpush3.msra.mxu1 %v2052_v1  ;;  %v1656_v55 = vpack.c.bf16 %v789_v42, %v780_v3  ;;  %v814_v1 = vsel %vm99_vm5, %v1843_v15, %v1844_v40  ;;  %v805_v2 = vsel %vm89_vm3, %v1839_v24, %v804_v44 }
 0x2ef   :  { %1655 = vmatprep.subr.bf16.mxu0 %v1654_v47  ;;  %685 = vmatprep.mubr.f32.mxu0 %v1987_v6  ;;  %v807_v7 = vsel %vm89_vm3, %v804_v44, %v1838_v31  ;;  %v1662_v23 = vpack.c.bf16 %v814_v1, %v2189_v45  ;;  %v1674_v21 = vpack.c.bf16 %v805_v2, %v796_v54 }
 0x2f0   :  { %1548 = vmatprep.mubr.msk.f32.mxu1 %vm1989_vm0, %v1987_v6  ;;  %1670 = vmatprep.subr.bf16.mxu1 %v1980_v0  ;;  %v1660_v61 = vpack.c.bf16 %v807_v7, %v798_v59  ;;  %v825_v24 = vsel %vm109_vm7, %v1849_v22, %v818_v58 }
 0x2f1   :  { %1451 = vmatmul.mubr.msk.f32.vlgmr.msra.gmra.mrb[4].mxu0 %vm618_vm11, %v2287_v37  ;;  %1549 = vmatmul.mubr.msk.f32.vlgmr.msra.gmra.mrb[4].mxu1 %vm618_vm11, %v2287_v37  ;;  %v809_v56 = vpop.permute.xlu1 %808 }
 0x2f2   :  { %1657 = vmatpush1.bf16.msra.mxu0 %v1656_v55  ;;  %1672 = vmatpush3.bf16.msra.mxu1 %v1671_v53  ;;  %v815_v63 = vsel %vm99_vm5, %v809_v56, %v1843_v15  ;;  %v816_v5 = vsel %vm99_vm5, %v1844_v40, %v809_v56  ;;  %v842_v40 = vsel %vm129_vm8, %v836_v33, %v838_v14 }
 0x2f3   :  { %1659 = vmatprep.subr.bf16.mxu0 %v1658_v57  ;;  %1673 = vmatprep.subr.bf16.mxu1 %v1980_v0  ;;  %v1664_v12 = vpack.c.bf16 %v815_v63, %v2229_v25  ;;  %v1677_v13 = vpack.c.bf16 %v816_v5, %v2191_v46 }
 0x2f4   :  { %908 = vmatprep.mubr.f32.mxu0 %v1987_v6  ;;  %1569 = vmatprep.mubr.msk.f32.mxu1 %vm1989_vm0, %v1987_v6 }
 0x2f5   :  { %v1852_v8 = vpop.permute.xlu1 %1851 }
 0x2f6   :  { %1661 = vmatpush1.bf16.msra.mxu0 %v1660_v61  ;;  %1675 = vmatpush3.bf16.msra.mxu1 %v1674_v21  ;;  %v1854_v10 = vunpack.i.h.bf16 %v1852_v8  ;;  %v1853_v11 = vunpack.i.l.bf16 %v1852_v8 }
 0x2f7   :  { %1663 = vmatprep.subr.bf16.mxu0 %v1662_v23  ;;  %1676 = vmatprep.subr.bf16.mxu1 %v1980_v0 }
 0x2f8   :  { %v832_v18 = vsel %vm119_vm6, %v1853_v11, %v1854_v10 }
 0x2f9   :  { %v827_v52 = vpop.permute.xlu1 %826  ;;  %v1666_v20 = vpack.c.bf16 %v832_v18, %v823_v16 }
 0x2fa   :  { %1665 = vmatpush1.bf16.msra.mxu0 %v1664_v12  ;;  %1678 = vmatpush3.bf16.msra.mxu1 %v1677_v13  ;;  %v833_v26 = vsel %vm119_vm6, %v827_v52, %v1853_v11  ;;  %v834_v30 = vsel %vm119_vm6, %v1854_v10, %v827_v52 }
 0x2fb   :  { %v1668_v31 = vpack.c.bf16 %v833_v26, %v824_v19  ;;  %v1680_v36 = vpack.c.bf16 %v834_v30, %v825_v24  ;;  %1667 = vmatprep.subr.bf16.mxu0 %v1666_v20  ;;  %1679 = vmatprep.subr.bf16.mxu1 %v1980_v0 }
 0x2fd   :  { %v840_v38 = vpop.permute.xlu1 %839 }
 0x2fe   :  { %1669 = vmatpush1.bf16.msra.mxu0 %v1668_v31  ;;  %1681 = vmatpush3.bf16.msra.mxu1 %v1680_v36  ;;  %v841_v35 = vsel %vm129_vm8, %v838_v14, %v840_v38  ;;  %v843_v39 = vsel %vm129_vm8, %v840_v38, %v836_v33 }
 0x2ff   :  { %860 = vmatprep.subr.mxu0 %v841_v35  ;;  %1567 = vmatprep.subr.mxu1 %v1987_v6 }
 0x302   :  { %861 = vmatpush1.msra.mxu0 %v842_v40  ;;  %1568 = vmatpush3.msra.mxu1 %v843_v39 }
 0x303   :  { %1453 = vmatmul.mubr.msk.f32.vlgmr.msra.gmra.mrb[6].mxu0 %vm133_vm9, %v2154_v17  ;;  %1570 = vmatmul.mubr.msk.f32.vlgmr.msra.gmra.mrb[6].mxu1 %vm133_vm9, %v2154_v17 }
 0x304   :  { %1698 = vmatprep.subr.bf16.mxu1 %v1980_v0  ;;  %1163 = vmatprep.mubr.f32.mxu0 %v1987_v6 }
 0x305   :  { %1590 = vmatprep.mubr.msk.f32.mxu1 %vm1989_vm0, %v1987_v6 }
 0x3bf   :  { %v2452_v15 = vpop.f32.mrb[2].mxu0  ;;  %v2454_v32 = vpop.f32.mrb[2].mxu1 }
 0x3c0   :  { %v2456_v34 = vpop.f32.mrb[3].mxu0  ;;  %v1545_v41 = vpop.f32.mrb[3].mxu1 }
 0x3c4   :  { %v2458_v42 = vpop.f32.mrb[4].mxu0  ;;  %v2460_v44 = vpop.f32.mrb[4].mxu1 }
 0x3c5   :  { %v2462_v47 = vpop.f32.mrb[5].mxu0  ;;  %v1550_v17 = vpop.f32.mrb[5].mxu1 }
 0x3d6   :  { %v910_v49 = vpop.f32.mrb[6].mxu0  ;;  %v981_v50 = vpop.f32.mrb[6].mxu1 }
 0x3d7   :  { %v985_v51 = vmul.f32 %v910_v49, %v2172_v27  ;;  %v912_v3 = vpop.f32.mrb[7].mxu0  ;;  %v1571_v53 = vpop.f32.mrb[7].mxu1  ;;  %v987_v1 = vmul.f32 %v981_v50, %v2176_v29 }
 0x3d8   :  { %v986_v55 = vmul.f32 %v912_v3, %v2174_v28  ;;  %v569_v53 = vmul.f32 0.2, %v2454_v32 }
 0x3d9   :  { %v992_v2 = vmul.f32 %v985_v51, %v910_v49  ;;  %v994_v58 = vmul.f32 %v987_v1, %v981_v50 }
 0x3da   :  { %v993_v7 = vmul.f32 %v986_v55, %v912_v3  ;;  %v988_v56 = vadd.f32 %v986_v55, %v985_v51 }
 0x3dc   :  { %v989_v57 = vadd.f32 %v988_v56, %v987_v1  ;;  %v995_v54 = vadd.f32 %v993_v7, %v992_v2  ;;  %v2527_v2 = vmax.f32 %v2454_v32, %v569_v53 }
 0x3de   :  { %990 = vadd.xlane.f32.xlu1 %v989_v57  ;;  %v996_v59 = vadd.f32 %v995_v54, %v994_v58  ;;  %v575_v56 = vmul.f32 %v2527_v2, %v2176_v29 }
 0x3e0   :  { %997 = vadd.xlane.f32.xlu0 %v996_v59 }
 0x46b   :  { %v991_v23 = vpop.xlane.xlu1 %990 }
 0x46c   :  { %v999_v61 = vmul.f32 0.00390625, %v991_v23 }
 0x46d   :  { %v998_v21 = vpop.xlane.xlu0 %997 }
 0x46e   :  { %v1000_v22 = vmul.f32 0.00390625, %v998_v21  ;;  %v1001_v62 = vmul.f32 %v999_v61, %v999_v61  ;;  %v1004_v10 = vsub.f32 %v910_v49, %v999_v61  ;;  %v1005_v11 = vsub.f32 %v912_v3, %v999_v61 }
 0x46f   :  { %v1006_v12 = vsub.f32 %v981_v50, %v999_v61  ;;  %v567_v49 = vmul.f32 0.2, %v2452_v15  ;;  %v568_v50 = vmul.f32 0.2, %v2456_v34 }
 0x470   :  { %v1002_v63 = vsub.f32 %v1000_v22, %v1001_v62 }
 0x471   :  { %v2516_v51 = vmax.f32 %v2452_v15, %v567_v49  ;;  %v2519_v3 = vmax.f32 %v2456_v34, %v568_v50 }
 0x472   :  { %v1003_v5 = vmax.f32 %v1002_v63, 0.0 }
 0x473   :  { %v573_v55 = vmul.f32 %v2516_v51, %v2172_v27  ;;  %v574_v1 = vmul.f32 %v2519_v3, %v2174_v28 }
 0x474   :  { %v1007_v8 = vadd.f32 1e-05, %v1003_v5 }
 0x475   :  { %v576_v7 = vadd.f32 %v574_v1, %v573_v55 }
 0x476   :  { %1893 = vrsqrt.f32 %v1007_v8 }
 0x477   :  { %v577_v15 = vadd.f32 %v576_v7, %v575_v56 }
 0x480   :  { %v1894_v13 = vpop.eup %1893 }
 0x481   :  { %v1009_v14 = vmul.f32 %v1894_v13, %v1004_v10  ;;  %v1010_v16 = vmul.f32 %v1894_v13, %v1005_v11  ;;  %v1011_v18 = vmul.f32 %v1894_v13, %v1006_v12 }
 0x483   :  { %v1012_v19 = vmul.f32 %v1009_v14, %v2203_v60  ;;  %v1013_v52 = vmul.f32 %v1010_v16, %v2203_v60  ;;  %v1014_v20 = vmul.f32 %v1011_v18, %v2203_v60 }
 0x485   :  { %v1015_v24 = vadd.f32 %v1012_v19, %v2205_v4  ;;  %v1016_v26 = vadd.f32 %v1013_v52, %v2205_v4  ;;  %v1017_v30 = vadd.f32 %v1014_v20, %v2205_v4 }
 0x487   :  { %v1018_v31 = vmul.f32 0.2, %v1015_v24  ;;  %v1019_v36 = vmul.f32 0.2, %v1016_v26  ;;  %v1020_v38 = vmul.f32 0.2, %v1017_v30 }
 0x489   :  { %v1021_v33 = vmax.f32 %v1015_v24, %v1018_v31  ;;  %v1022_v35 = vmax.f32 %v1016_v26, %v1019_v36  ;;  %v1023_v41 = vmax.f32 %v1017_v30, %v1020_v38 }
 0x48b   :  { %v2474_v39 = vmul.f32 %v1021_v33, %v2172_v27  ;;  %v2477_v40 = vmul.f32 %v1022_v35, %v2174_v28  ;;  %v2484_v4 = vmul.f32 %v1023_v41, %v2176_v29 }
 0x48d   :  { %v1860_v60 = vpack.i.bf16 %v2477_v40, %v2474_v39  ;;  %v1875_v17 = vpack.i.bf16 %v2484_v4, %v2477_v40 }
 0x48f   :  { %1861 = vrot.lane.b32.xlu1 %v1860_v60, %s1982_s2  ;;  %1856 = vrot.lane.b32.xlu0 %v1860_v60, %s1981_s14 }
 0x493   :  { %1031 = vrot.lane.b32.xlu1 %v2484_v4, %s1981_s14  ;;  %1040 = vrot.lane.b32.xlu0 %v2484_v4, %s1982_s2 }
 0x497   :  { %1866 = vrot.lane.b32.xlu1 %v1860_v60, %s1984_s16  ;;  %1871 = vrot.lane.b32.xlu0 %v1860_v60, %s1983_s15 }
 0x49b   :  { %1049 = vrot.lane.b32.xlu1 %v2484_v4, %s1984_s16  ;;  %1058 = vrot.lane.b32.xlu0 %v2484_v4, %s1983_s15 }
 0x49f   :  { %1876 = vrot.lane.b32.xlu1 %v1875_v17, %s1985_s17  ;;  %1063 = vrot.lane.b32.xlu0 %v2474_v39, %s1985_s17 }
 0x4a3   :  { %1881 = vrot.lane.b32.xlu1 %v1875_v17, %s1988_s19  ;;  %1886 = vrot.lane.b32.xlu0 %v1875_v17, %s1986_s18 }
 0x4a7   :  { %1072 = vrot.lane.b32.xlu1 %v2474_v39, %s1988_s19  ;;  %1081 = vrot.lane.b32.xlu0 %v2474_v39, %s1986_s18 }
 0x4ab   :  { %1092 = vrot.lane.b32.xlu1 %v2477_v40, %s1990_s20  ;;  %1094 = vrot.lane.b32.xlu0 %v2484_v4, %s1990_s20 }
 0x4af   :  { %1090 = vrot.lane.b32.xlu1 %v2474_v39, %s1990_s20 }
 0x4ca   :  { %578 = vadd.xlane.f32.xlu0 %v577_v15 }
 0x4e0   :  { %591 = vrot.lane.b32.xlu0 %v2184_v43, %s1995_s28 }
 0x501   :  { %v1862_v34 = vpop.permute.xlu1 %1861  ;;  %v1857_v57 = vpop.permute.xlu0 %1856 }
 0x502   :  { %v1864_v58 = vunpack.i.h.bf16 %v1862_v34  ;;  %v1863_v54 = vunpack.i.l.bf16 %v1862_v34  ;;  %v1859_v59 = vunpack.i.h.bf16 %v1857_v57  ;;  %v1858_v23 = vunpack.i.l.bf16 %v1857_v57 }
 0x504   :  { %v1034_v61 = vsel %vm59_vm1, %v1858_v23, %v1859_v59  ;;  %v1043_v32 = vsel %vm69_vm2, %v1863_v54, %v1864_v58 }
 0x505   :  { %v1032_v21 = vpop.permute.xlu1 %1031  ;;  %v1041_v22 = vpop.permute.xlu0 %1040  ;;  %v1682_v62 = vpack.c.bf16 %v1043_v32, %v1034_v61 }
 0x506   :  { %v1033_v63 = vsel %vm59_vm1, %v1859_v59, %v1032_v21  ;;  %v1035_v5 = vsel %vm59_vm1, %v1032_v21, %v1858_v23  ;;  %v1042_v8 = vsel %vm69_vm2, %v1864_v58, %v1041_v22  ;;  %v1044_v10 = vsel %vm69_vm2, %v1041_v22, %v1863_v54 }
 0x507   :  { %v1684_v11 = vpack.c.bf16 %v1044_v10, %v1035_v5  ;;  %v1699_v12 = vpack.c.bf16 %v1042_v8, %v1033_v63  ;;  %1683 = vmatprep.subr.bf16.mxu0 %v1682_v62 }
 0x509   :  { %v1867_v13 = vpop.permute.xlu1 %1866  ;;  %v1872_v14 = vpop.permute.xlu0 %1871  ;;  %1685 = vmatpush1.bf16.msra.mxu0 %v1684_v11  ;;  %1700 = vmatpush3.bf16.msra.mxu1 %v1699_v12 }
 0x50a   :  { %v1869_v16 = vunpack.i.h.bf16 %v1867_v13  ;;  %v1868_v18 = vunpack.i.l.bf16 %v1867_v13  ;;  %v1874_v19 = vunpack.i.h.bf16 %v1872_v14  ;;  %v1873_v52 = vunpack.i.l.bf16 %v1872_v14  ;;  %1701 = vmatprep.subr.bf16.mxu1 %v1980_v0 }
 0x50c   :  { %v1052_v20 = vsel %vm79_vm4, %v1868_v18, %v1869_v16  ;;  %v1061_v24 = vsel %vm89_vm3, %v1873_v52, %v1874_v19 }
 0x50d   :  { %v1050_v26 = vpop.permute.xlu1 %1049  ;;  %v1059_v30 = vpop.permute.xlu0 %1058  ;;  %v1686_v31 = vpack.c.bf16 %v1061_v24, %v1052_v20 }
 0x50e   :  { %v1051_v36 = vsel %vm79_vm4, %v1869_v16, %v1050_v26  ;;  %v1053_v38 = vsel %vm79_vm4, %v1050_v26, %v1868_v18  ;;  %v1060_v33 = vsel %vm89_vm3, %v1874_v19, %v1059_v30  ;;  %v1062_v35 = vsel %vm89_vm3, %v1059_v30, %v1873_v52 }
 0x50f   :  { %v1688_v41 = vpack.c.bf16 %v1062_v35, %v1053_v38  ;;  %v1702_v60 = vpack.c.bf16 %v1060_v33, %v1051_v36  ;;  %1687 = vmatprep.subr.bf16.mxu0 %v1686_v31 }
 0x511   :  { %v1877_v17 = vpop.permute.xlu1 %1876  ;;  %v1064_v49 = vpop.permute.xlu0 %1063  ;;  %1689 = vmatpush1.bf16.msra.mxu0 %v1688_v41  ;;  %1703 = vmatpush3.bf16.msra.mxu1 %v1702_v60 }
 0x512   :  { %v1879_v50 = vunpack.i.h.bf16 %v1877_v17  ;;  %v1878_v53 = vunpack.i.l.bf16 %v1877_v17  ;;  %1704 = vmatprep.subr.bf16.mxu1 %v1980_v0 }
 0x514   :  { %v1070_v55 = vsel %vm99_vm5, %v1064_v49, %v1878_v53  ;;  %v1071_v1 = vsel %vm99_vm5, %v1879_v50, %v1064_v49  ;;  %v1069_v7 = vsel %vm99_vm5, %v1878_v53, %v1879_v50 }
 0x515   :  { %v1692_v56 = vpack.c.bf16 %v1070_v55, %v2474_v39  ;;  %v1705_v15 = vpack.c.bf16 %v1071_v1, %v2484_v4  ;;  %v1882_v34 = vpop.permute.xlu1 %1881  ;;  %v1887_v57 = vpop.permute.xlu0 %1886  ;;  %v1690_v58 = vpack.c.bf16 %v1069_v7, %v2477_v40 }
 0x516   :  { %v1884_v54 = vunpack.i.h.bf16 %v1882_v34  ;;  %v1883_v59 = vunpack.i.l.bf16 %v1882_v34  ;;  %v1889_v23 = vunpack.i.h.bf16 %v1887_v57  ;;  %v1888_v61 = vunpack.i.l.bf16 %v1887_v57 }
 0x517   :  { %1691 = vmatprep.subr.bf16.mxu0 %v1690_v58  ;;  %1706 = vmatpush3.bf16.msra.mxu1 %v1705_v15 }
 0x518   :  { %1693 = vmatpush1.bf16.msra.mxu0 %v1692_v56  ;;  %v1078_v32 = vsel %vm109_vm7, %v1883_v59, %v1884_v54  ;;  %v1087_v21 = vsel %vm119_vm6, %v1888_v61, %v1889_v23  ;;  %1707 = vmatprep.subr.bf16.mxu1 %v1980_v0 }
 0x519   :  { %v1073_v39 = vpop.permute.xlu1 %1072  ;;  %v1082_v4 = vpop.permute.xlu0 %1081  ;;  %v1694_v22 = vpack.c.bf16 %v1087_v21, %v1078_v32 }
 0x51a   :  { %v1079_v40 = vsel %vm109_vm7, %v1073_v39, %v1883_v59  ;;  %v1080_v62 = vsel %vm109_vm7, %v1884_v54, %v1073_v39  ;;  %v1088_v63 = vsel %vm119_vm6, %v1082_v4, %v1888_v61  ;;  %v1089_v5 = vsel %vm119_vm6, %v1889_v23, %v1082_v4 }
 0x51b   :  { %v1696_v8 = vpack.c.bf16 %v1088_v63, %v1079_v40  ;;  %v1708_v10 = vpack.c.bf16 %v1089_v5, %v1080_v62  ;;  %1695 = vmatprep.subr.bf16.mxu0 %v1694_v22  ;;  %v1997_v62 = vmov 2  }
 0x51c   :  { %1890 = vset.pattern.permute.xlu0 %v1997_v62 }
 0x51d   :  { %v1093_v11 = vpop.permute.xlu1 %1092  ;;  %v1095_v0 = vpop.permute.xlu0 %1094  ;;  %1697 = vmatpush1.bf16.msra.mxu0 %v1696_v8  ;;  %1709 = vmatpush3.bf16.msra.mxu1 %v1708_v10 }
 0x51e   :  { %v1096_v12 = vsel %vm129_vm8, %v1093_v11, %v1095_v0  ;;  %1588 = vmatprep.subr.mxu1 %v1987_v6 }
 0x51f   :  { %1115 = vmatprep.subr.mxu0 %v1096_v12 }
 0x521   :  { %v1091_v13 = vpop.permute.xlu1 %1090 }
 0x522   :  { %v1097_v14 = vsel %vm129_vm8, %v1091_v13, %v1093_v11  ;;  %v1098_v16 = vsel %vm129_vm8, %v1095_v0, %v1091_v13 }
 0x523   :  { %1116 = vmatpush1.msra.mxu0 %v1097_v14  ;;  %1589 = vmatpush3.msra.mxu1 %v1098_v16 }
 0x524   :  { %1455 = vmatmul.mubr.msk.f32.vlgmr.msra.gmra.mrb[8].mxu0 %vm133_vm9, %v2366_v48  ;;  %1591 = vmatmul.mubr.msk.f32.vlgmr.msra.gmra.mrb[8].mxu1 %vm133_vm9, %v2366_v48 }
 0x525   :  { %1280 = vmatprep.subr.mxu0 %v2189_v45  ;;  %1593 = vmatprep.subr.mxu1 %v1987_v6 }
 0x526   :  { %1281 = vmatpush1.msra.mxu0 %v2229_v25  ;;  %1344 = vmatprep.mubr.f32.mxu0 %v1987_v6 }
 0x527   :  { %1594 = vmatpush3.msra.mxu1 %v2191_v46  ;;  %1595 = vmatprep.mubr.msk.f32.mxu1 %vm1989_vm0, %v1987_v6 }
 0x528   :  { %1458 = vmatmul.mubr.msk.f32.vlgmr.msra.gmra.mrb[10].mxu0 %vm618_vm11, %v2287_v37  ;;  %1596 = vmatmul.mubr.msk.f32.vlgmr.msra.gmra.mrb[10].mxu1 %vm618_vm11, %v2287_v37 }
 0x557   :  { %v579_v9 = vpop.xlane.xlu0 %578 }
 0x558   :  { %v580_v48 = vmul.f32 0.00390625, %v579_v9 }
 0x55a   :  { %v581_v45 = vmul.f32 %v580_v48, %v2184_v43 }
 0x55b   :  { %v592_v15 = vpop.permute.xlu0 %591 }
 0x55c   :  { %v583_v25 = vsel %vm582_vm12, %v581_v45, 0.0 }
 0x55d   :  { %v584_v18 = vrot.slane %v583_v25, 4 }
 0x55f   :  { %v585_v30 = vadd.f32 %v584_v18, %v583_v25 }
 0x561   :  { %v586_v17 = vrot.slane %v585_v30, 2 }
 0x563   :  { %v587_v55 = vadd.f32 %v586_v17, %v585_v30 }
 0x565   :  { %v588_v1 = vrot.slane %v587_v55, 1 }
 0x567   :  { %v589_v7 = vadd.f32 %v588_v1, %v587_v55 }
 0x569   :  { %v590_v56 = vmax.f32 %v589_v7, 0.0 }
 0x56b   :  { %v594_v34 = vmul.f32 %v592_v15, %v590_v56 }
 0x5f7   :  { %v1165_v19 = vpop.f32.mrb[8].mxu0  ;;  %v1236_v52 = vpop.f32.mrb[8].mxu1 }
 0x5f8   :  { %v1240_v46 = vmul.f32 0.2, %v1165_v19  ;;  %v1242_v20 = vmul.f32 0.2, %v1236_v52  ;;  %v1167_v24 = vpop.f32.mrb[9].mxu0  ;;  %v1592_v6 = vpop.f32.mrb[9].mxu1 }
 0x5f9   :  { %v1241_v26 = vmul.f32 0.2, %v1167_v24 }
 0x5fa   :  { %v2604_v31 = vmax.f32 %v1165_v19, %v1240_v46  ;;  %v2606_v36 = vmax.f32 %v1236_v52, %v1242_v20 }
 0x5fb   :  { %v2608_v37 = vmax.f32 %v1167_v24, %v1241_v26  ;;  %v2610_v38 = vpop.f32.mrb[10].mxu0  ;;  %v2612_v43 = vpop.f32.mrb[10].mxu1 }
 0x5fc   :  { %v1246_v33 = vmul.f32 %v2604_v31, %v2172_v27  ;;  %v2616_v35 = vpop.f32.mrb[11].mxu0  ;;  %v1597_v41 = vpop.f32.mrb[11].mxu1  ;;  %v1248_v49 = vmul.f32 %v2606_v36, %v2176_v29 }
 0x5fd   :  { %v1247_v60 = vmul.f32 %v2608_v37, %v2174_v28  ;;  %v1903_v28 = vld [vmem:[%s2658_s3] sm:$0xff]  ;;  %s1998_s3 = smov [#allocation7]  }
 0x5fe   :  { %s1433_s6 = sshll.u32 %s1998_s3, 4  ;;  %s1434_s6 = int_to_ptr.vmem [resolvable:$true] %s1433_s6 }
 0x5ff   :  { %v1249_v50 = vadd.f32 %v1247_v60, %v1246_v33  ;;  %s1948_s7 = scalar_lea.vmem %s1434_s6, 768  ;;  %p1953_p3 = scmp.lt.s32.totalorder %s1434_s6, %s1434_s6 }
 0x600   :  { %p1949_p2 = scmp.ne.s32.totalorder %s1434_s6, %s1948_s7  ;;  %p1954_p4 = scmp.lt.s32.totalorder %s1948_s7, %s1948_s7 }
 0x601   :  { %v1250_v53 = vadd.f32 %v1249_v50, %v1248_v49 }
 0x602   :  { %p1955_p5 = por %p1954_p4, %p1953_p3 }
 0x603   :  { %1251 = vadd.xlane.f32.xlu1 %v1250_v53 }
 0x604   :  { %p1956_p6 = pnand %p1955_p5, %p1949_p2 }
 0x614   :  { %596 = vrot.lane.b32.xlu1 %v594_v34, %s1996_s29 }
 0x690   :  { %v1252_v27 = vpop.xlane.xlu1 %1251 }
 0x691   :  { %v1253_v57 = vmul.f32 0.00390625, %v1252_v27 }
 0x693   :  { %v1254_v58 = vmul.f32 %v1903_v28, %v1253_v57 }
 0x694   :  { %v597_v29 = vpop.permute.xlu1 %596 }
 0x695   :  { %v1255_v54 = vsel %vm582_vm12, %v1254_v58, 0.0  ;;  %v600_v59 = vsel %vm599_vm13, %v597_v29, 0.0 }
 0x696   :  { %v1256_v23 = vrot.slane %v1255_v54, 4  ;;  %601 = vadd.xlane.f32.xlu1 %v600_v59 }
 0x698   :  { %v1257_v61 = vadd.f32 %v1256_v23, %v1255_v54 }
 0x69a   :  { %v1258_v32 = vrot.slane %v1257_v61, 2 }
 0x69c   :  { %v1259_v21 = vadd.f32 %v1258_v32, %v1257_v61 }
 0x69e   :  { %v1260_v39 = vrot.slane %v1259_v21, 1 }
 0x6a0   :  { %v1261_v4 = vadd.f32 %v1260_v39, %v1259_v21 }
 0x6a2   :  { %v1262_v22 = vmax.f32 %v1261_v4, 0.0 }
 0x6a4   :  { %v1263_v40 = vmul.f32 %v1262_v22, %v592_v15 }
 0x6a6   :  { %1265 = vrot.lane.b32.xlu0 %v1263_v40, %s1996_s29 }
 0x718   :  { %v1266_v63 = vpop.permute.xlu0 %1265 }
 0x719   :  { %v1268_v5 = vsel %vm599_vm13, %v1266_v63, 0.0 }
 0x71a   :  { %1269 = vadd.xlane.f32.xlu0 %v1268_v5 }
 0x723   :  { %v602_v8 = vpop.xlane.xlu1 %601 }
 0x724   :  { %v1450_v10 = vmul.f32 -1.442695, %v602_v8 }
 0x726   :  { %1895 = vpow2.f32 %v1450_v10 }
 0x730   :  { %613 = vperm.xlu0 %1890, %v1903_v28   ;;  %v1896_v11 = vpop.eup %1895 }
 0x731   :  { %v606_v0 = vadd.f32 1.0, %v1896_v11 }
 0x733   :  { %1897 = vrcp.f32 %v606_v0 }
 0x73d   :  { %v1898_v14 = vpop.eup %1897 }
 0x73e   :  { %v609_v9 = vmul.f32 %v1898_v14, %v2516_v51  ;;  %v610_v48 = vmul.f32 %v1898_v14, %v2519_v3  ;;  %v611_v45 = vmul.f32 %v1898_v14, %v2527_v2 }
 0x7a7   :  { %v1270_v12 = vpop.xlane.xlu0 %1269 }
 0x7a8   :  { %v1457_v13 = vmul.f32 -1.442695, %v1270_v12 }
 0x7aa   :  { %1899 = vpow2.f32 %v1457_v13 }
 0x7af   :  { %v614_v16 = vpop.permute.xlu0 %613 }
 0x7b0   :  { %v688_v25 = vadd.f32 %v2458_v42, %v614_v16  ;;  %v690_v18 = vadd.f32 %v2462_v47, %v614_v16  ;;  %v759_v19 = vadd.f32 %v2460_v44, %v614_v16  ;;  %v1347_v3 = vadd.f32 %v2610_v38, %v614_v16 }
 0x7b1   :  { %v1349_v2 = vadd.f32 %v2616_v35, %v614_v16  ;;  %v1418_v26 = vadd.f32 %v2612_v43, %v614_v16 }
 0x7b2   :  { %v762_v52 = vadd.f32 %v688_v25, %v609_v9  ;;  %v763_v46 = vadd.f32 %v690_v18, %v610_v48  ;;  %v764_v20 = vadd.f32 %v759_v19, %v611_v45 }
 0x7b4   :  { %v1900_v24 = vpop.eup %1899  ;;  %765 = vst [vmem:[#allocation7] sm:$0xff] %v762_v52  ;;  %766 = vst [vmem:[#allocation7 + $0x8] sm:$0xff] %v763_v46 }
 0x7b5   :  { %767 = vst [vmem:[#allocation7 + $0x10] sm:$0xff] %v764_v20  ;;  %v1274_v6 = vadd.f32 1.0, %v1900_v24 }
 0x7b7   :  { %1901 = vrcp.f32 %v1274_v6 }
 0x7c1   :  { %v1902_v51 = vpop.eup %1901 }
 0x7c2   :  { %v1277_v42 = vmul.f32 %v1902_v51, %v2604_v31  ;;  %v1278_v44 = vmul.f32 %v1902_v51, %v2608_v37  ;;  %v1279_v47 = vmul.f32 %v1902_v51, %v2606_v36 }
 0x7c4   :  { %v1421_v30 = vadd.f32 %v1347_v3, %v1277_v42  ;;  %v1422_v33 = vadd.f32 %v1349_v2, %v1278_v44  ;;  %v1423_v41 = vadd.f32 %v1418_v26, %v1279_v47 }
 0x7c6   :  { %1425 = vst [vmem:[#allocation7 + $0x18] sm:$0xff] %v1421_v30  ;;  %1426 = vst [vmem:[#allocation7 + $0x20] sm:$0xff] %v1422_v33 }
 0x7c7   :  { %1427 = vst [vmem:[#allocation7 + $0x28] sm:$0xff] %v1423_v41 }
 0x7c8   :  { %1959 = shalt.err (!%p1956_p6)
}
 0x7c9   :  { %s1960_s10 = scalar_lea.hbm %s2659_s4, 768 }
 0x7ca   :  { %p1961_p7 = scmp.ne.s32.totalorder %s2659_s4, %s1960_s10  ;;  %p1964_p8 = scmp.lt.u32.totalorder %s1960_s10, %s2659_s4 }
 0x7cc   :  { %p1966_p9 = pnand %p1964_p8, %p1961_p7 }
 0x7ce   :  { %1969 = shalt.err (!%p1966_p9)
}
 0x7cf   :  { %1439 = dma.vmem_to_hbm [thread:$0]  %s1434_s6, 768, %s2659_s4, [#allocation4], %s1977_s25, %s1977_s25, %s1978_s26  }
 0x7d0   :  { %1974 = dma.done.wait [#allocation4], 768  }
 0x7d1   :  { %1975 = vsyncadd [#allocation4], 4294966528 }
 0x7d2   :  { %1443 = vsyncpa [#allocation3], 1 }
 0x7d3   :  { %1444 = vsyncpa [#allocation6], 1 }
 0x7d4   :  { %1445 = vsyncpa [#allocation4], 1 }

</bundles_post_ra>
